<compile_context>
chip_gen: v6e
topology: v6e:2x2x1
jax: 0.10.0
libtpu: 0.0.40
codegen_flags: <defaults>
</compile_context>

<pallas_src>
import math

import jax
import jax.numpy as jnp
from jax.experimental import pallas as pl
from jax.experimental.pallas import tpu as pltpu

IMAGE_SIZE = (28, 28)
IMAGE_PIXELS = IMAGE_SIZE[0] * IMAGE_SIZE[1]   # 784
NEURONS_FC1 = 256
NEURONS_FC2 = 128
NEURONS_FC3 = 64
NEURONS_FC4 = 32
OUTPUT_CLASSES = 10

NEURONS_FC3_PAD = 128       # 64  -> 128 (lane-dense hidden activations)
NEURONS_FC4_PAD = 128       # 32  -> 128
OUTPUT_PAD = 128            # 10  -> 128 (unmasked lane-dense stores)

MAX_TILE_B = 1024           # big tiles amortize the ~0.35 us/step overhead


def _round_up(v, m):
    return ((v + m - 1) // m) * m


def _choose_tile_b(batch, max_tile=MAX_TILE_B):
    """Adaptive batch tile.

    - batch <= 128: one grid step, padded only to the 8-row sublane granule
      (avoids paying DMA/MXU for mostly-phantom rows).
    - larger batches: at least two grid steps (so the "parallel" batch axis can
      shard across v7x's two TensorCores), tiles a multiple of 8 rows, capped
      at MAX_TILE_B for throughput on large batches.
    """
    batch = max(int(batch), 1)
    if batch <= 128:
        return _round_up(batch, 8)
    return min(max_tile, _round_up(pl.cdiv(batch, 2), 8))


def _mlp_kernel(x_ref,
                w1_ref, b1_ref,
                w2_ref, b2_ref,
                w3_ref, b3_ref,
                w4_ref, b4_ref,
                w5_ref, b5_ref,
                out_ref):
    """Fused 5-layer MLP on one (tile_b, 784) batch tile.

    bf16 inputs/weights, f32 MXU accumulation, f32 bias add + ReLU, bf16
    inter-layer activations.  Hidden widths 64/32 and the 10-wide output are
    pre-padded (with zeros) to 128 lanes, so every ref here is lane-dense.
    """
    h = x_ref[...]                                                      # (B, 784) bf16

    h = jnp.dot(h, w1_ref[...], preferred_element_type=jnp.float32) + b1_ref[...]
    h = jnp.maximum(h, 0.0).astype(jnp.bfloat16)                        # (B, 256)

    h = jnp.dot(h, w2_ref[...], preferred_element_type=jnp.float32) + b2_ref[...]
    h = jnp.maximum(h, 0.0).astype(jnp.bfloat16)                        # (B, 128)

    h = jnp.dot(h, w3_ref[...], preferred_element_type=jnp.float32) + b3_ref[...]
    h = jnp.maximum(h, 0.0).astype(jnp.bfloat16)                        # (B, 128 = 64+pad)

    h = jnp.dot(h, w4_ref[...], preferred_element_type=jnp.float32) + b4_ref[...]
    h = jnp.maximum(h, 0.0).astype(jnp.bfloat16)                        # (B, 128 = 32+pad)

    out = jnp.dot(h, w5_ref[...], preferred_element_type=jnp.float32) + b5_ref[...]
    out_ref[...] = out.astype(out_ref.dtype)                            # (B, 128 = 10+pad)


def mlp_forward(x, params, *, tile_b=None):
    """x: (B, 1, 28, 28) float32 (NCHW, like the PyTorch module). Returns (B, 10) f32."""
    batch = x.shape[0]
    if tile_b is None:
        tile_b = _choose_tile_b(batch)
    b_pad = pl.cdiv(batch, tile_b) * tile_b

    # Single pass over x: reshape + bf16 cast.  Batch pad (if any) is applied
    # to the bf16 array.  No K-pad: the x block carries the full 784 last dim.
    x2d = x.reshape(batch, IMAGE_PIXELS).astype(jnp.bfloat16)
    if b_pad != batch:
        x2d = jnp.pad(x2d, ((0, b_pad - batch), (0, 0)))

    (w1, b1), (w2, b2), (w3, b3), (w4, b4), (w5, b5) = params

    # bf16 weights; zero-pad the narrow layers to 128 lanes (zero pad rows/cols
    # leave the math unchanged).  Biases stay f32 (added post-accumulation).
    w1b = w1.astype(jnp.bfloat16)                                        # (784, 256)
    w2b = w2.astype(jnp.bfloat16)                                        # (256, 128)
    w3p = jnp.pad(w3, ((0, 0), (0, NEURONS_FC3_PAD - NEURONS_FC3))).astype(jnp.bfloat16)
    w4p = jnp.pad(w4, ((0, NEURONS_FC3_PAD - NEURONS_FC3),
                       (0, NEURONS_FC4_PAD - NEURONS_FC4))).astype(jnp.bfloat16)
    w5p = jnp.pad(w5, ((0, NEURONS_FC4_PAD - NEURONS_FC4),
                       (0, OUTPUT_PAD - OUTPUT_CLASSES))).astype(jnp.bfloat16)
    b1f = b1.astype(jnp.float32)
    b2f = b2.astype(jnp.float32)
    b3f = jnp.pad(b3, ((0, 0), (0, NEURONS_FC3_PAD - NEURONS_FC3))).astype(jnp.float32)
    b4f = jnp.pad(b4, ((0, 0), (0, NEURONS_FC4_PAD - NEURONS_FC4))).astype(jnp.float32)
    b5f = jnp.pad(b5, ((0, 0), (0, OUTPUT_PAD - OUTPUT_CLASSES))).astype(jnp.float32)

    grid = (b_pad // tile_b,)
    const = lambda i: (0, 0)   # weights/biases stay VMEM-resident across steps

    layer_macs = (IMAGE_PIXELS * NEURONS_FC1
                  + NEURONS_FC1 * NEURONS_FC2
                  + NEURONS_FC2 * NEURONS_FC3_PAD
                  + NEURONS_FC3_PAD * NEURONS_FC4_PAD
                  + NEURONS_FC4_PAD * OUTPUT_PAD)
    weight_bytes = 2 * layer_macs   # bf16 weights (element count == MACs/row)
    cost = pl.CostEstimate(
        flops=2 * b_pad * layer_macs,
        transcendentals=0,
        bytes_accessed=(b_pad * IMAGE_PIXELS * 2      # x stream (bf16)
                        + weight_bytes                # resident weights
                        + b_pad * OUTPUT_PAD * 2),    # bf16 writeback
    )

    out = pl.pallas_call(
        _mlp_kernel,
        out_shape=jax.ShapeDtypeStruct((b_pad, OUTPUT_PAD), jnp.bfloat16),
        grid=grid,
        in_specs=[
            pl.BlockSpec((tile_b, IMAGE_PIXELS), lambda i: (i, 0)),      # x tile (full 784 K)
            pl.BlockSpec((IMAGE_PIXELS, NEURONS_FC1), const),            # w1
            pl.BlockSpec((1, NEURONS_FC1), const),                       # b1
            pl.BlockSpec((NEURONS_FC1, NEURONS_FC2), const),             # w2
            pl.BlockSpec((1, NEURONS_FC2), const),                       # b2
            pl.BlockSpec((NEURONS_FC2, NEURONS_FC3_PAD), const),         # w3 (col-padded)
            pl.BlockSpec((1, NEURONS_FC3_PAD), const),                   # b3 (padded)
            pl.BlockSpec((NEURONS_FC3_PAD, NEURONS_FC4_PAD), const),     # w4 (padded)
            pl.BlockSpec((1, NEURONS_FC4_PAD), const),                   # b4 (padded)
            pl.BlockSpec((NEURONS_FC4_PAD, OUTPUT_PAD), const),          # w5 (padded)
            pl.BlockSpec((1, OUTPUT_PAD), const),                        # b5 (padded)
        ],
        out_specs=pl.BlockSpec((tile_b, OUTPUT_PAD), lambda i: (i, 0)),
        compiler_params=pltpu.CompilerParams(
            dimension_semantics=(pltpu.PARALLEL,),   # batch axis; >=2 steps on big batches
            vmem_limit_bytes=32 * 1024 * 1024,
        ),
        cost_estimate=cost,
    )(x2d, w1b, b1f, w2b, b2f, w3p, b3f, w4p, b4f, w5p, b5f)

    # Slice away batch/lane padding; return f32 logits like the torch module.
    return out[:batch, :OUTPUT_CLASSES].astype(jnp.float32)


def init_params(key):
    """Deterministic init mimicking torch.nn.Linear defaults (uniform ±1/sqrt(fan_in)).

    Weights are stored as (in_features, out_features) — the transpose of
    torch's (out, in) layout — so the kernel computes x @ W + b.
    """
    dims = [IMAGE_PIXELS, NEURONS_FC1, NEURONS_FC2, NEURONS_FC3, NEURONS_FC4,
            OUTPUT_CLASSES]
    params = []
    for i in range(len(dims) - 1):
        fan_in, fan_out = dims[i], dims[i + 1]
        key, wk, bk = jax.random.split(key, 3)
        bound = 1.0 / math.sqrt(fan_in)
        w = jax.random.uniform(wk, (fan_in, fan_out), jnp.float32, -bound, bound)
        b = jax.random.uniform(bk, (1, fan_out), jnp.float32, -bound, bound)
        params.append((w, b))
    return params


def mlp_reference(x, params, *, compute_dtype=jnp.bfloat16):
    """Pure-JAX reference using the same bf16-inputs / f32-accumulation recipe
    as the kernel (matches the torch f32 forward up to bf16 rounding)."""
    h = x.reshape(x.shape[0], IMAGE_PIXELS).astype(jnp.float32)
    for i, (w, b) in enumerate(params):
        h = jnp.dot(h.astype(compute_dtype), w.astype(compute_dtype),
                    preferred_element_type=jnp.float32) + b.astype(jnp.float32)
        if i < len(params) - 1:
            h = jnp.maximum(h, 0.0)
    return h


if __name__ == "__main__":
    key = jax.random.PRNGKey(0)
    pkey, xkey = jax.random.split(key)

    params = init_params(pkey)
    # batch=300: exercises batch padding, the adaptive tile (152 rows), and a
    # 2-step grid, while staying small/fast.
    batch = 300
    x = jax.random.normal(xkey, (batch, 1, IMAGE_SIZE[0], IMAGE_SIZE[1]), jnp.float32)

    out = jax.block_until_ready(mlp_forward(x, params))
    ref = mlp_reference(x, params)

    assert out.shape == (batch, OUTPUT_CLASSES)
    # bf16 writeback carries ~3 significant decimal digits; 1e-2 abs/rel is
    # ample for logits of this scale.
    assert jnp.allclose(out, ref, atol=1e-2, rtol=1e-2), \
        float(jnp.max(jnp.abs(out - ref)))

    print("KERNEL_OK")
</pallas_src>

<mosaic_0001>
module attributes {stable_mosaic.version = 11 : i64} {
  func.func @_mlp_kernel(%arg0: i32, %arg1: memref<152x784xbf16, #tpu.memory_space<vmem>>, %arg2: memref<784x256xbf16, #tpu.memory_space<vmem>>, %arg3: memref<1x256xf32, #tpu.memory_space<vmem>>, %arg4: memref<256x128xbf16, #tpu.memory_space<vmem>>, %arg5: memref<1x128xf32, #tpu.memory_space<vmem>>, %arg6: memref<128x128xbf16, #tpu.memory_space<vmem>>, %arg7: memref<1x128xf32, #tpu.memory_space<vmem>>, %arg8: memref<128x128xbf16, #tpu.memory_space<vmem>>, %arg9: memref<1x128xf32, #tpu.memory_space<vmem>>, %arg10: memref<128x128xbf16, #tpu.memory_space<vmem>>, %arg11: memref<1x128xf32, #tpu.memory_space<vmem>>, %arg12: memref<152x128xbf16, #tpu.memory_space<vmem>>) attributes {dimension_semantics = [#tpu.dimension_semantics<parallel>], iteration_bounds = array<i64: 2>, scalar_prefetch = 0 : i64, scratch_operands = 0 : i64, tpu.core_type = #tpu.core_type<tc>, window_params = [{transform_indices = @transform_0, window_bounds = array<i64: 152, 784>}, {pipeline_mode = #tpu.pipeline_mode<synchronous>, transform_indices = @transform_1, window_bounds = array<i64: 784, 256>}, {pipeline_mode = #tpu.pipeline_mode<synchronous>, transform_indices = @transform_2, window_bounds = array<i64: 1, 256>}, {pipeline_mode = #tpu.pipeline_mode<synchronous>, transform_indices = @transform_3, window_bounds = array<i64: 256, 128>}, {pipeline_mode = #tpu.pipeline_mode<synchronous>, transform_indices = @transform_4, window_bounds = array<i64: 1, 128>}, {pipeline_mode = #tpu.pipeline_mode<synchronous>, transform_indices = @transform_5, window_bounds = array<i64: 128, 128>}, {pipeline_mode = #tpu.pipeline_mode<synchronous>, transform_indices = @transform_6, window_bounds = array<i64: 1, 128>}, {pipeline_mode = #tpu.pipeline_mode<synchronous>, transform_indices = @transform_7, window_bounds = array<i64: 128, 128>}, {pipeline_mode = #tpu.pipeline_mode<synchronous>, transform_indices = @transform_8, window_bounds = array<i64: 1, 128>}, {pipeline_mode = #tpu.pipeline_mode<synchronous>, transform_indices = @transform_9, window_bounds = array<i64: 128, 128>}, {pipeline_mode = #tpu.pipeline_mode<synchronous>, transform_indices = @transform_10, window_bounds = array<i64: 1, 128>}, {transform_indices = @transform_11, window_bounds = array<i64: 152, 128>}]} {
    %c0 = arith.constant 0 : index
    %c0_0 = arith.constant 0 : index
    %0 = vector.load %arg1[%c0, %c0_0] : memref<152x784xbf16, #tpu.memory_space<vmem>>, vector<152x784xbf16>
    %c0_1 = arith.constant 0 : index
    %c0_2 = arith.constant 0 : index
    %1 = vector.load %arg2[%c0_1, %c0_2] : memref<784x256xbf16, #tpu.memory_space<vmem>>, vector<784x256xbf16>
    %cst = arith.constant dense<0.000000e+00> : vector<152x256xf32>
    %2 = tpu.matmul %0, %1, %cst {dimension_numbers = #tpu.dot_dimension_numbers<[1], [0], [0], [1], [0, 0, 1, 1], [], []>} : vector<152x784xbf16>, vector<784x256xbf16>, vector<152x256xf32> -> vector<152x256xf32>
    %c0_3 = arith.constant 0 : index
    %c0_4 = arith.constant 0 : index
    %3 = vector.load %arg3[%c0_3, %c0_4] : memref<1x256xf32, #tpu.memory_space<vmem>>, vector<1x256xf32>
    %4 = vector.broadcast %3 : vector<1x256xf32> to vector<152x256xf32>
    %5 = arith.addf %2, %4 : vector<152x256xf32>
    %cst_5 = arith.constant 0.000000e+00 : f32
    %6 = vector.broadcast %cst_5 : f32 to vector<152x256xf32>
    %7 = arith.maximumf %5, %6 : vector<152x256xf32>
    %8 = arith.truncf %7 : vector<152x256xf32> to vector<152x256xbf16>
    %c0_6 = arith.constant 0 : index
    %c0_7 = arith.constant 0 : index
    %9 = vector.load %arg4[%c0_6, %c0_7] : memref<256x128xbf16, #tpu.memory_space<vmem>>, vector<256x128xbf16>
    %cst_8 = arith.constant dense<0.000000e+00> : vector<152x128xf32>
    %10 = tpu.matmul %8, %9, %cst_8 {dimension_numbers = #tpu.dot_dimension_numbers<[1], [0], [0], [1], [0, 0, 1, 1], [], []>} : vector<152x256xbf16>, vector<256x128xbf16>, vector<152x128xf32> -> vector<152x128xf32>
    %c0_9 = arith.constant 0 : index
    %c0_10 = arith.constant 0 : index
    %11 = vector.load %arg5[%c0_9, %c0_10] : memref<1x128xf32, #tpu.memory_space<vmem>>, vector<1x128xf32>
    %12 = vector.broadcast %11 : vector<1x128xf32> to vector<152x128xf32>
    %13 = arith.addf %10, %12 : vector<152x128xf32>
    %cst_11 = arith.constant 0.000000e+00 : f32
    %14 = vector.broadcast %cst_11 : f32 to vector<152x128xf32>
    %15 = arith.maximumf %13, %14 : vector<152x128xf32>
    %16 = arith.truncf %15 : vector<152x128xf32> to vector<152x128xbf16>
    %c0_12 = arith.constant 0 : index
    %c0_13 = arith.constant 0 : index
    %17 = vector.load %arg6[%c0_12, %c0_13] : memref<128x128xbf16, #tpu.memory_space<vmem>>, vector<128x128xbf16>
    %cst_14 = arith.constant dense<0.000000e+00> : vector<152x128xf32>
    %18 = tpu.matmul %16, %17, %cst_14 {dimension_numbers = #tpu.dot_dimension_numbers<[1], [0], [0], [1], [0, 0, 1, 1], [], []>} : vector<152x128xbf16>, vector<128x128xbf16>, vector<152x128xf32> -> vector<152x128xf32>
    %c0_15 = arith.constant 0 : index
    %c0_16 = arith.constant 0 : index
    %19 = vector.load %arg7[%c0_15, %c0_16] : memref<1x128xf32, #tpu.memory_space<vmem>>, vector<1x128xf32>
    %20 = vector.broadcast %19 : vector<1x128xf32> to vector<152x128xf32>
    %21 = arith.addf %18, %20 : vector<152x128xf32>
    %cst_17 = arith.constant 0.000000e+00 : f32
    %22 = vector.broadcast %cst_17 : f32 to vector<152x128xf32>
    %23 = arith.maximumf %21, %22 : vector<152x128xf32>
    %24 = arith.truncf %23 : vector<152x128xf32> to vector<152x128xbf16>
    %c0_18 = arith.constant 0 : index
    %c0_19 = arith.constant 0 : index
    %25 = vector.load %arg8[%c0_18, %c0_19] : memref<128x128xbf16, #tpu.memory_space<vmem>>, vector<128x128xbf16>
    %cst_20 = arith.constant dense<0.000000e+00> : vector<152x128xf32>
    %26 = tpu.matmul %24, %25, %cst_20 {dimension_numbers = #tpu.dot_dimension_numbers<[1], [0], [0], [1], [0, 0, 1, 1], [], []>} : vector<152x128xbf16>, vector<128x128xbf16>, vector<152x128xf32> -> vector<152x128xf32>
    %c0_21 = arith.constant 0 : index
    %c0_22 = arith.constant 0 : index
    %27 = vector.load %arg9[%c0_21, %c0_22] : memref<1x128xf32, #tpu.memory_space<vmem>>, vector<1x128xf32>
    %28 = vector.broadcast %27 : vector<1x128xf32> to vector<152x128xf32>
    %29 = arith.addf %26, %28 : vector<152x128xf32>
    %cst_23 = arith.constant 0.000000e+00 : f32
    %30 = vector.broadcast %cst_23 : f32 to vector<152x128xf32>
    %31 = arith.maximumf %29, %30 : vector<152x128xf32>
    %32 = arith.truncf %31 : vector<152x128xf32> to vector<152x128xbf16>
    %c0_24 = arith.constant 0 : index
    %c0_25 = arith.constant 0 : index
    %33 = vector.load %arg10[%c0_24, %c0_25] : memref<128x128xbf16, #tpu.memory_space<vmem>>, vector<128x128xbf16>
    %cst_26 = arith.constant dense<0.000000e+00> : vector<152x128xf32>
    %34 = tpu.matmul %32, %33, %cst_26 {dimension_numbers = #tpu.dot_dimension_numbers<[1], [0], [0], [1], [0, 0, 1, 1], [], []>} : vector<152x128xbf16>, vector<128x128xbf16>, vector<152x128xf32> -> vector<152x128xf32>
    %c0_27 = arith.constant 0 : index
    %c0_28 = arith.constant 0 : index
    %35 = vector.load %arg11[%c0_27, %c0_28] : memref<1x128xf32, #tpu.memory_space<vmem>>, vector<1x128xf32>
    %36 = vector.broadcast %35 : vector<1x128xf32> to vector<152x128xf32>
    %37 = arith.addf %34, %36 : vector<152x128xf32>
    %38 = arith.truncf %37 : vector<152x128xf32> to vector<152x128xbf16>
    %c0_29 = arith.constant 0 : index
    %c0_30 = arith.constant 0 : index
    %39 = vector.load %arg12[%c0_29, %c0_30] : memref<152x128xbf16, #tpu.memory_space<vmem>>, vector<152x128xbf16>
    tpu.vector_store %arg12[%c0_29, %c0_30], %38 {strides = array<i32>} : memref<152x128xbf16, #tpu.memory_space<vmem>>, vector<152x128xbf16>,
    return
  }
  func.func @transform_0(%arg0: i32) -> (i32, i32) {
    %c0_i32 = arith.constant 0 : i32
    %c0_i32_0 = arith.constant 0 : i32
    return %arg0, %c0_i32 : i32, i32
  }
  func.func @transform_1(%arg0: i32) -> (i32, i32) {
    %c0_i32 = arith.constant 0 : i32
    %c0_i32_0 = arith.constant 0 : i32
    %c0_i32_1 = arith.constant 0 : i32
    return %c0_i32, %c0_i32_0 : i32, i32
  }
  func.func @transform_2(%arg0: i32) -> (i32, i32) {
    %c0_i32 = arith.constant 0 : i32
    %c0_i32_0 = arith.constant 0 : i32
    %c0_i32_1 = arith.constant 0 : i32
    return %c0_i32, %c0_i32_0 : i32, i32
  }
  func.func @transform_3(%arg0: i32) -> (i32, i32) {
    %c0_i32 = arith.constant 0 : i32
    %c0_i32_0 = arith.constant 0 : i32
    %c0_i32_1 = arith.constant 0 : i32
    return %c0_i32, %c0_i32_0 : i32, i32
  }
  func.func @transform_4(%arg0: i32) -> (i32, i32) {
    %c0_i32 = arith.constant 0 : i32
    %c0_i32_0 = arith.constant 0 : i32
    %c0_i32_1 = arith.constant 0 : i32
    return %c0_i32, %c0_i32_0 : i32, i32
  }
  func.func @transform_5(%arg0: i32) -> (i32, i32) {
    %c0_i32 = arith.constant 0 : i32
    %c0_i32_0 = arith.constant 0 : i32
    %c0_i32_1 = arith.constant 0 : i32
    return %c0_i32, %c0_i32_0 : i32, i32
  }
  func.func @transform_6(%arg0: i32) -> (i32, i32) {
    %c0_i32 = arith.constant 0 : i32
    %c0_i32_0 = arith.constant 0 : i32
    %c0_i32_1 = arith.constant 0 : i32
    return %c0_i32, %c0_i32_0 : i32, i32
  }
  func.func @transform_7(%arg0: i32) -> (i32, i32) {
    %c0_i32 = arith.constant 0 : i32
    %c0_i32_0 = arith.constant 0 : i32
    %c0_i32_1 = arith.constant 0 : i32
    return %c0_i32, %c0_i32_0 : i32, i32
  }
  func.func @transform_8(%arg0: i32) -> (i32, i32) {
    %c0_i32 = arith.constant 0 : i32
    %c0_i32_0 = arith.constant 0 : i32
    %c0_i32_1 = arith.constant 0 : i32
    return %c0_i32, %c0_i32_0 : i32, i32
  }
  func.func @transform_9(%arg0: i32) -> (i32, i32) {
    %c0_i32 = arith.constant 0 : i32
    %c0_i32_0 = arith.constant 0 : i32
    %c0_i32_1 = arith.constant 0 : i32
    return %c0_i32, %c0_i32_0 : i32, i32
  }
  func.func @transform_10(%arg0: i32) -> (i32, i32) {
    %c0_i32 = arith.constant 0 : i32
    %c0_i32_0 = arith.constant 0 : i32
    %c0_i32_1 = arith.constant 0 : i32
    return %c0_i32, %c0_i32_0 : i32, i32
  }
  func.func @transform_11(%arg0: i32) -> (i32, i32) {
    %c0_i32 = arith.constant 0 : i32
    %c0_i32_0 = arith.constant 0 : i32
    return %arg0, %c0_i32 : i32, i32
  }
}

</mosaic_0001>

<bundles_post_ra>
// kernel: tpu_custom_call.1
= control target key start
LH: loop header
LB: loop body
LE: loop exit
PB: predicated region body
PF: predicated region fallthrough
CT: control target
= control target key end

     0   :  { %s5114_s0 = inlined_call_operand.hbm [shape: bf16[304,784], index: 0, kind: input, shape index: {}]   ;;  %s5115_s1 = inlined_call_operand.hbm [shape: bf16[784,256], index: 1, kind: input, shape index: {}]   ;;  %s5116_s2 = inlined_call_operand.vmem [shape: f32[1,256], index: 2, kind: input, shape index: {}]   ;;  %s5117_s3 = inlined_call_operand.hbm [shape: bf16[256,128], index: 3, kind: input, shape index: {}]   ;;  %s5118_s4 = inlined_call_operand.vmem [shape: f32[1,128], index: 4, kind: input, shape index: {}]   ;;  %s5119_s5 = inlined_call_operand.hbm [shape: bf16[128,128], index: 5, kind: input, shape index: {}]   ;;  %s5120_s6 = inlined_call_operand.vmem [shape: f32[1,128], index: 6, kind: input, shape index: {}]   ;;  %s5121_s7 = inlined_call_operand.hbm [shape: bf16[128,128], index: 7, kind: input, shape index: {}]   ;;  %s5122_s8 = inlined_call_operand.vmem [shape: f32[1,128], index: 8, kind: input, shape index: {}]   ;;  %s5123_s9 = inlined_call_operand.hbm [shape: bf16[128,128], index: 9, kind: input, shape index: {}]   ;;  %s5124_s10 = inlined_call_operand.vmem [shape: f32[1,128], index: 10, kind: input, shape index: {}]   ;;  %s5125_s11 = inlined_call_operand.hbm [shape: bf16[304,128], index: 11, kind: output, shape index: {}]  }
   0x1   :  { %5130 = sst [smem:[#allocation26_spill]] %s5115_s1 }
   0x2   :  { %5131 = sst [smem:[#allocation27_spill]] %s5117_s3 }
   0x3   :  { %5132 = sst [smem:[#allocation28_spill]] %s5119_s5 }
   0x4   :  { %5133 = sst [smem:[#allocation29_spill]] %s5121_s7 }
   0x5   :  { %5134 = sst [smem:[#allocation30_spill]] %s5123_s9 }
   0x6   :  { %16 = vsyncpa [#allocation3], 0 }
   0x7   :  { %18 = vsyncpa [#allocation3 + $0x1], 0 }
   0x8   :  { %19 = vsyncpa [#allocation6], 0 }
   0x9   :  { %20 = vsyncpa [#allocation9], 0 }
   0xa   :  { %21 = vsyncpa [#allocation12], 0 }
   0xb   :  { %22 = vsyncpa [#allocation4], 0 }
   0xc   :  { %24 = vsyncpa [#allocation4 + $0x1], 0  ;;  %s4533_s17 = smov 0   ;;  %s4535_s18 = smov 0  }
   0xd   :  { %s4537_s19 = smov 0   ;;  %s4539_s20 = smov 0  }
   0xe LB: > { %s4457_s21 = smov [#allocation5]   ;;  %s4554_s23 = sadd.s32 4294967295, %s4455_s20   ;;  %s4455_s20 = sphi %s4539_s20, %s5176_s20   ;;  %s4451_s19 = sphi %s4537_s19, %s5175_s19   ;;  %s4447_s18 = sphi %s4535_s18, %s5174_s18   ;;  %s4443_s17 = sphi %s4533_s17, %s5173_s17  }
   0xf   : > { %s309_s22 = sshll.u32 %s4457_s21, 4  ;;  %p3225_p0 = scmp.ge.s32.totalorder %s4455_s20, 1  ;;  %s310_s22 = int_to_ptr.vmem [resolvable:$true] %s309_s22 }
  0x10   : > { %p5126_p1 = scmp.eq.s32.totalorder %s4554_s23, 0  ;;  %p297_p2 = scmp.lt.s32.totalorder %s4455_s20, 3 }
  0x11   : > { %s4458_s26 = smov [#allocation8]   ;;  %s4232_s29 = scalar_lea.vmem %s310_s22, 12544 }
  0x12   : > { %p4559_p3 = pnand %p3225_p0, %p297_p2  ;;  %s341_s27 = sshll.u32 %s4458_s26, 4  ;;  %s342_s27 = int_to_ptr.vmem [resolvable:$true] %s341_s27 }
  0x13   : > { %p4233_p8 = scmp.ne.s32.totalorder %s310_s22, %s4232_s29  ;;  %p4240_p11 = scmp.lt.s32.totalorder %s310_s22, %s310_s22 }
  0x14   : > { %s5135_s24 = scalar_select %p4559_p3, 1, 0 }
  0x15   : > { %p3854_p5 = pneg %p4559_p3  ;;  %p4241_p12 = scmp.lt.s32.totalorder %s4232_s29, %s4232_s29 }
  0x17   : > { %p4568_p6 = pnand %p3854_p5, %p5126_p1  ;;  %p4242_p13 = por %p4241_p12, %p4240_p11 }
  0x19   : > { %p4574_p7 = pneg %p4568_p6 }
  0x1b   : > { %p4235_p9 = pnand %p4233_p8, %p4574_p7 }
  0x1d   : > { %p4236_p10 = pneg %p4235_p9 }
  0x1f   : > { %p4243_p0 = pnand %p4242_p13, %p4236_p10 }
  0x21   : > { %4246 = shalt.err (!%p4243_p0)
}
  0x22   : > { %s4459_s30 = smov 128   ;;  %s4460_s12 = smov 8  }
  0x23   : > { %s5138_s1 = sld [smem:[#allocation26_spill]]  ;;  %s4258_s15 = scalar_lea.vmem %s342_s27, 1024 }
  0x24   : > { %p4259_p2 = scmp.ne.s32.totalorder %s342_s27, %s4258_s15  ;;  %p4266_p9 = scmp.lt.s32.totalorder %s342_s27, %s342_s27 }
  0x25   : > { %p4267_p4 = scmp.lt.s32.totalorder %s4258_s15, %s4258_s15 }
  0x26   : > { %p4261_p5 = pnand %p4259_p2, %p4574_p7 }
  0x27   : > { %p4268_p1 = por %p4267_p4, %p4266_p9 }
  0x28   : > { %p4262_p8 = pneg %p4261_p5 }
  0x29   : > { %3857 = dma.hbm_to_vmem [thread:$0]  (!%p4568_p6), %s5138_s1, 12544, %s310_s22, [#allocation6], %s4459_s30, %s4459_s30, %s4460_s12  }
  0x2a   : > { %p4269_p11 = pnand %p4268_p1, %p4262_p8 }
  0x2c   : > { %4272 = shalt.err (!%p4269_p11)
}
  0x2d   : > { %s4461_s16 = smov 64   ;;  %s4462_s21 = smov 4  }
  0x2e   : > { %s5139_s5 = sld [smem:[#allocation28_spill]]  ;;  %s4463_s29 = smov [#allocation7]  }
  0x2f   : > { %s325_s30 = sshll.u32 %s4463_s29, 4  ;;  %s4464_s12 = smov [#allocation10]   ;;  %s326_s30 = int_to_ptr.vmem [resolvable:$true] %s325_s30 }
  0x30   : > { %s357_s13 = sshll.u32 %s4464_s12, 4  ;;  %s4284_s14 = scalar_lea.vmem %s326_s30, 2048  ;;  %s358_s13 = int_to_ptr.vmem [resolvable:$true] %s357_s13 }
  0x31   : > { %p4285_p1 = scmp.ne.s32.totalorder %s326_s30, %s4284_s14  ;;  %p4292_p12 = scmp.lt.s32.totalorder %s326_s30, %s326_s30 }
  0x32   : > { %p4293_p13 = scmp.lt.s32.totalorder %s4284_s14, %s4284_s14 }
  0x33   : > { %p4287_p4 = pnand %p4285_p1, %p4574_p7 }
  0x34   : > { %3863 = dma.hbm_to_vmem [thread:$0]  (!%p4568_p6), %s5139_s5, 1024, %s342_s27, [#allocation9], %s4461_s16, %s4461_s16, %s4462_s21  }
  0x35   : > { %p4288_p10 = pneg %p4287_p4  ;;  %p4294_p0 = por %p4293_p13, %p4292_p12 }
  0x37   : > { %p4295_p2 = pnand %p4294_p0, %p4288_p10 }
  0x39   : > { %4298 = shalt.err (!%p4295_p2)
}
  0x3a   : > { %s5140_s3 = sld [smem:[#allocation27_spill]]  ;;  %s4310_s26 = scalar_lea.vmem %s358_s13, 1024 }
  0x3b   : > { %p4311_p5 = scmp.ne.s32.totalorder %s358_s13, %s4310_s26  ;;  %p4318_p11 = scmp.lt.s32.totalorder %s358_s13, %s358_s13 }
  0x3c   : > { %p4319_p1 = scmp.lt.s32.totalorder %s4310_s26, %s4310_s26 }
  0x3d   : > { %p4313_p8 = pnand %p4311_p5, %p4574_p7 }
  0x3e   : > { %p4320_p4 = por %p4319_p1, %p4318_p11 }
  0x3f   : > { %p4314_p9 = pneg %p4313_p8 }
  0x40   : > { %3860 = dma.hbm_to_vmem [thread:$0]  (!%p4568_p6), %s5140_s3, 2048, %s326_s30, [#allocation6], %s4461_s16, %s4461_s16, %s4462_s21  }
  0x41   : > { %p4321_p10 = pnand %p4320_p4, %p4314_p9 }
  0x43   : > { %4324 = shalt.err (!%p4321_p10)
}
  0x44   : > { %s5141_s7 = sld [smem:[#allocation29_spill]]  ;;  %s4465_s30 = smov [#allocation11]  }
  0x45   : > { %s373_s12 = sshll.u32 %s4465_s30, 4  ;;  %s374_s12 = int_to_ptr.vmem [resolvable:$true] %s373_s12 }
  0x46   : > { %s4336_s14 = scalar_lea.vmem %s374_s12, 1024  ;;  %p4344_p2 = scmp.lt.s32.totalorder %s374_s12, %s374_s12 }
  0x47   : > { %p4337_p12 = scmp.ne.s32.totalorder %s374_s12, %s4336_s14  ;;  %p4345_p5 = scmp.lt.s32.totalorder %s4336_s14, %s4336_s14 }
  0x49   : > { %p4339_p13 = pnand %p4337_p12, %p4574_p7  ;;  %p4346_p8 = por %p4345_p5, %p4344_p2 }
  0x4a   : > { %3866 = dma.hbm_to_vmem [thread:$0]  (!%p4568_p6), %s5141_s7, 1024, %s358_s13, [#allocation9], %s4461_s16, %s4461_s16, %s4462_s21  }
  0x4b   : > { %p4340_p0 = pneg %p4339_p13 }
  0x4d   : > { %p4347_p9 = pnand %p4346_p8, %p4340_p0 }
  0x4f   : > { %4350 = shalt.err (!%p4347_p9)
}
  0x50   : > { %s5142_s9 = sld [smem:[#allocation30_spill]]  ;;  %s3224_s25 = sadd.s32 4294967294, %s4455_s20  }
  0x51   : > { %s4627_s28 = sadd.s32 1, %s4455_s20   ;;  %s37_s26 = sadd.s32 1, %s4451_s19 }
  0x52   : > { %s34_s15 = ssub.s32 %s4455_s20, %s4627_s28  ;;  %p44_p11 = scmp.ne.s32.totalorder %s4451_s19, %s4447_s18 }
  0x53   : > { %p35_p7 = scmp.eq.s32.totalorder %s34_s15, 0  ;;  %p45_p1 = scmp.eq.s32.totalorder %s4455_s20, 0 }
  0x54   : > { %p50_p4 = scmp.ne.s32.totalorder %s4447_s18, %s4443_s17  ;;  %p5143_p12 = scmp.eq.s32.totalorder %s4554_s23, 0 }
  0x55   : > { %s4638_s22 = scalar_select %p35_p7, %s4451_s19, %s37_s26  }
  0x56   : > { %3869 = dma.hbm_to_vmem [thread:$0]  (!%p4568_p6), %s5142_s9, 1024, %s374_s12, [#allocation12], %s4461_s16, %s4461_s16, %s4462_s21  }
  0x57   : > { %p46_p10 = por %p45_p1, %p44_p11  ;;  %p4642_p13 = por %p5143_p12, %p50_p4 }
  0x58   : > { %p284_p6 = scmp.eq.s32.totalorder %s4554_s23, 1  ;;  %p290_p0 = scmp.eq.s32.totalorder %s3224_s25, 1 }
  0x59   : > { %s5144_s29 = scalar_select %p4642_p13, 1, 0 }
  0x5a   : > { %p3883_p2 = scmp.lt.s32.totalorder %s4455_s20, 2  ;;  %s390_s16 = sand.u32 1, %s4451_s19  }
  0x5b   : > { %p4649_p5 = por %p284_p6, %p44_p11  ;;  %p4653_p8 = por %p290_p0, %p50_p4 }
  0x5c   : > { %s3826_s12 = smul.u32 532, %s390_s16  ;;  %p4658_p9 = pnand %p3883_p2, %p46_p10 }
  0x5d   : > { %s5145_s21 = scalar_select %p4649_p5, 1, 0 }
  0x5e   : > { %s5146_s30 = scalar_select %p4653_p8, 1, 0 }
  0x5f   : > { %s3884_s14 = smul.u32 8512, %s4455_s20  ;;  %s394_s26 = scalar_lea.vmem [#allocation2], %s3826_s12 }
  0x60   : > { %s402_s1 = sshll.u32 %s394_s26, 4  ;;  %s4669_s3 = scalar_lea.sflag [#allocation3], %s390_s16  ;;  %s4667_s1 = int_to_ptr.vmem [resolvable:$true] %s402_s1 }
  0x61   : > { %s4665_s25 = scalar_lea.hbm %s5114_s0, %s3884_s14  ;;  %p4353_p11 = pneg %p4658_p9 }
  0x62   : > { %s4351_s5 = scalar_lea.hbm %s4665_s25, 8512  ;;  %s4356_s14 = scalar_lea.hbm %s5114_s0, 17024 }
  0x63   : > { %p4352_p7 = scmp.ne.s32.totalorder %s4665_s25, %s4351_s5  ;;  %p4357_p10 = scmp.lt.s32.totalorder %s4665_s25, %s5114_s0 }
  0x64   : > { %p4358_p12 = scmp.lt.s32.totalorder %s4356_s14, %s4351_s5 }
  0x65   : > { %p4354_p1 = pnand %p4353_p11, %p4352_p7 }
  0x66   : > { %p4359_p6 = por %p4358_p12, %p4357_p10 }
  0x67   : > { %p4355_p4 = pneg %p4354_p1 }
  0x69   : > { %p4360_p0 = pnand %p4359_p6, %p4355_p4 }
  0x6b   : > { %4363 = shalt.err (!%p4360_p0)
}
  0x6c   : > { %s4364_s16 = scalar_lea.vmem %s4667_s1, 8512  ;;  %s4466_s12 = smov [#allocation2]  }
  0x6d   : > { %p4365_p2 = scmp.ne.s32.totalorder %s4667_s1, %s4364_s16  ;;  %s4369_s26 = sshll.u32 %s4466_s12, 4  ;;  %s4370_s26 = int_to_ptr.vmem [resolvable:$false] %s4369_s26 }
  0x6e   : > { %s4371_s7 = scalar_lea.vmem %s4370_s26, 17024  ;;  %p4372_p1 = scmp.lt.s32.totalorder %s4667_s1, %s4370_s26 }
  0x6f   : > { %p4367_p8 = pnand %p4365_p2, %p4353_p11  ;;  %p4373_p5 = scmp.lt.s32.totalorder %s4371_s7, %s4364_s16 }
  0x71   : > { %p4368_p7 = pneg %p4367_p8  ;;  %p4374_p13 = por %p4373_p5, %p4372_p1 }
  0x73   : > { %p4375_p3 = pnand %p4374_p13, %p4368_p7 }
  0x75   : > { %4378 = shalt.err (!%p4375_p3)
}
  0x76   : > { %s4467_s5 = smov 448   ;;  %s4468_s9 = smov 28  }
  0x77   : > { %3873 = dma.hbm_to_vmem [thread:$0]  (!%p4658_p9), %s4665_s25, 8512, %s4667_s1, %s4669_s3, %s4467_s5, %s4467_s5, %s4468_s9  }
  0x78   : > { %p5148_p11 = scmp.ne.s32.totalorder %s5135_s24, 0 }
  0x7a   : > { %414 = sbr.rel (%p5148_p11) target bundleno = 1414 (0x586), region = 64 }
  0x7f   : > { %s4693_s13 = sand.u32 1, %s4447_s18   ;;  %p5149_p3 = scmp.ne.s32.totalorder %s5144_s29, 0 }
  0x80   : > { %s3828_s14 = smul.u32 532, %s4693_s13  ;;  %s417_s15 = scalar_lea.sflag [#allocation3], %s4693_s13 }
  0x82   : > { %s4697_s16 = scalar_lea.vmem [#allocation2], %s3828_s14 }
  0x83   : > { %4422 = dma.done.wait (%p5149_p3), %s417_s15, 8512  }
  0x84   : > { %4424 = vsyncadd (%p5149_p3), %s417_s15, 4294958784  ;;  %p5150_p13 = scmp.eq.s32.totalorder %s4554_s23, 0 }
  0x86   : > { %4426 = dma.done.wait (%p5150_p13), [#allocation6], 14592   ;;  %p5151_p5 = pmov %p5150_p13 }
  0x88   : > { %4428 = vsyncadd (%p5151_p5), [#allocation6], 4294952704  ;;  %p5152_p8 = pmov %p5151_p5 }
  0x89   : > { %p5153_p9 = pmov %p5151_p5 }
  0x8a   : > { %4430 = dma.done.wait (%p5152_p8), [#allocation9], 2048  }
  0x8b   : > { %4432 = vsyncadd (%p5153_p9), [#allocation9], 4294965248  ;;  %p5154_p4 = pmov %p5151_p5 }
  0x8d   : > { %4434 = dma.done.wait (%p5154_p4), [#allocation12], 1024   ;;  %p5155_p10 = pmov %p5154_p4 }
  0x8e   : > { %v3937_v0 = vld [vmem:[#allocation5 + $0x74] ss:$8 sps:$4 sm:$0xff]   ;;  %v3941_v2 = vld [vmem:[#allocation5 + $0x70] ss:$8 sps:$4 sm:$0xff]   ;;  %v3943_v4 = vld [vmem:[#allocation5 + $0x64] ss:$8 sps:$4 sm:$0xff]  }
  0x8f   : > { %4436 = vsyncadd (%p5155_p10), [#allocation12], 4294966272  ;;  %v3939_v1 = vld [vmem:[#allocation5 + $0x174] ss:$8 sps:$4 sm:$0xff]   ;;  %1528 = vmatprep.subr.bf16.mxu0 %v3937_v0  ;;  %v3942_v3 = vld [vmem:[#allocation5 + $0x170] ss:$8 sps:$4 sm:$0xff]  }
  0x90   : > { %1659 = vmatprep.subr.bf16.mxu1 %v3939_v1  ;;  %1529 = vmatpush1.bf16.msra.mxu0 %v3941_v2  ;;  %v3945_v5 = vld [vmem:[#allocation5 + $0x164] ss:$8 sps:$4 sm:$0xff]   ;;  %v3947_v6 = vld [vmem:[#allocation5 + $0x60] ss:$8 sps:$4 sm:$0xff]   ;;  %v3949_v8 = vld [vmem:[#allocation5 + $0x54] ss:$8 sps:$4 sm:$0xff]  }
  0x91   : > { %1660 = vmatpush1.bf16.msra.mxu1 %v3942_v3  ;;  %1530 = vmatprep.subr.bf16.mxu0 %v3943_v4  ;;  %v3948_v7 = vld [vmem:[#allocation5 + $0x160] ss:$8 sps:$4 sm:$0xff]   ;;  %v3951_v9 = vld [vmem:[#allocation5 + $0x154] ss:$8 sps:$4 sm:$0xff]   ;;  %v3953_v10 = vld [vmem:[#allocation5 + $0x50] ss:$8 sps:$4 sm:$0xff]  }
  0x92   : > { %1661 = vmatprep.subr.bf16.mxu1 %v3945_v5  ;;  %v3954_v11 = vld [vmem:[#allocation5 + $0x150] ss:$8 sps:$4 sm:$0xff]   ;;  %v3955_v12 = vld [vmem:[#allocation5 + $0x44] ss:$8 sps:$4 sm:$0xff]   ;;  %v3959_v14 = vld [vmem:[#allocation5 + $0x40] ss:$8 sps:$4 sm:$0xff]  }
  0x93   : > { %v3957_v13 = vld [vmem:[#allocation5 + $0x144] ss:$8 sps:$4 sm:$0xff]   ;;  %v3960_v15 = vld [vmem:[#allocation5 + $0x140] ss:$8 sps:$4 sm:$0xff]   ;;  %v3961_v16 = vld [vmem:[#allocation5 + $0x34] ss:$8 sps:$4 sm:$0xff]  }
  0x94   : > { %1531 = vmatpush1.bf16.msra.mxu0 %v3947_v6  ;;  %v3963_v17 = vld [vmem:[#allocation5 + $0x134] ss:$8 sps:$4 sm:$0xff]   ;;  %v3965_v18 = vld [vmem:[#allocation5 + $0x30] ss:$8 sps:$4 sm:$0xff]   ;;  %v3967_v20 = vld [vmem:[#allocation5 + $0x24] ss:$8 sps:$4 sm:$0xff]  }
  0x95   : > { %1662 = vmatpush1.bf16.msra.mxu1 %v3948_v7  ;;  %1532 = vmatprep.subr.bf16.mxu0 %v3949_v8  ;;  %v3966_v19 = vld [vmem:[#allocation5 + $0x130] ss:$8 sps:$4 sm:$0xff]   ;;  %v3969_v21 = vld [vmem:[#allocation5 + $0x124] ss:$8 sps:$4 sm:$0xff]   ;;  %v3971_v22 = vld [vmem:[#allocation5 + $0x20] ss:$8 sps:$4 sm:$0xff]  }
  0x96   : > { %1663 = vmatprep.subr.bf16.mxu1 %v3951_v9  ;;  %v3972_v23 = vld [vmem:[#allocation5 + $0x120] ss:$8 sps:$4 sm:$0xff]   ;;  %v3973_v24 = vld [vmem:[#allocation5 + $0x14] ss:$8 sps:$4 sm:$0xff]   ;;  %v3977_v26 = vld [vmem:[#allocation5 + $0x10] ss:$8 sps:$4 sm:$0xff]  }
  0x97   : > { %v3975_v25 = vld [vmem:[#allocation5 + $0x114] ss:$8 sps:$4 sm:$0xff]   ;;  %v3978_v27 = vld [vmem:[#allocation5 + $0x110] ss:$8 sps:$4 sm:$0xff]   ;;  %v3979_v28 = vld [vmem:[#allocation5 + $0x4] ss:$8 sps:$4 sm:$0xff]  }
  0x98   : > { %1533 = vmatpush1.bf16.msra.mxu0 %v3953_v10  ;;  %v3981_v29 = vld [vmem:[#allocation5 + $0x104] ss:$8 sps:$4 sm:$0xff]   ;;  %v3983_v30 = vld [vmem:[#allocation5] ss:$8 sps:$4 sm:$0xff]   ;;  %v3985_v32 = vld [vmem:[#allocation5 + $0xf4] ss:$8 sps:$4 sm:$0xff]  }
  0x99   : > { %1664 = vmatpush1.bf16.msra.mxu1 %v3954_v11  ;;  %1534 = vmatprep.subr.bf16.mxu0 %v3955_v12  ;;  %v3984_v31 = vld [vmem:[#allocation5 + $0x100] ss:$8 sps:$4 sm:$0xff]   ;;  %v3987_v33 = vld [vmem:[#allocation5 + $0x1f4] ss:$8 sps:$4 sm:$0xff]   ;;  %v3989_v34 = vld [vmem:[#allocation5 + $0xf0] ss:$8 sps:$4 sm:$0xff]  }
  0x9a   : > { %1665 = vmatprep.subr.bf16.mxu1 %v3957_v13  ;;  %v3990_v35 = vld [vmem:[#allocation5 + $0x1f0] ss:$8 sps:$4 sm:$0xff]   ;;  %v3991_v36 = vld [vmem:[#allocation5 + $0xe4] ss:$8 sps:$4 sm:$0xff]   ;;  %v3995_v38 = vld [vmem:[#allocation5 + $0xe0] ss:$8 sps:$4 sm:$0xff]  }
  0x9b   : > { %v3993_v37 = vld [vmem:[#allocation5 + $0x1e4] ss:$8 sps:$4 sm:$0xff]   ;;  %v3996_v39 = vld [vmem:[#allocation5 + $0x1e0] ss:$8 sps:$4 sm:$0xff]   ;;  %v3997_v40 = vld [vmem:[#allocation5 + $0xd4] ss:$8 sps:$4 sm:$0xff]  }
  0x9c   : > { %1535 = vmatpush1.bf16.msra.mxu0 %v3959_v14  ;;  %v3999_v41 = vld [vmem:[#allocation5 + $0x1d4] ss:$8 sps:$4 sm:$0xff]   ;;  %v4001_v42 = vld [vmem:[#allocation5 + $0xd0] ss:$8 sps:$4 sm:$0xff]   ;;  %v4003_v44 = vld [vmem:[#allocation5 + $0xc4] ss:$8 sps:$4 sm:$0xff]  }
  0x9d   : > { %1666 = vmatpush1.bf16.msra.mxu1 %v3960_v15  ;;  %1536 = vmatprep.subr.bf16.mxu0 %v3961_v16  ;;  %v4002_v43 = vld [vmem:[#allocation5 + $0x1d0] ss:$8 sps:$4 sm:$0xff]   ;;  %v4005_v45 = vld [vmem:[#allocation5 + $0x1c4] ss:$8 sps:$4 sm:$0xff]   ;;  %v4007_v46 = vld [vmem:[#allocation5 + $0xc0] ss:$8 sps:$4 sm:$0xff]  }
  0x9e   : > { %1667 = vmatprep.subr.bf16.mxu1 %v3963_v17  ;;  %v4008_v47 = vld [vmem:[#allocation5 + $0x1c0] ss:$8 sps:$4 sm:$0xff]   ;;  %v4009_v48 = vld [vmem:[#allocation5 + $0xb4] ss:$8 sps:$4 sm:$0xff]   ;;  %v4013_v52 = vld [vmem:[#allocation5 + $0xb0] ss:$8 sps:$4 sm:$0xff]  }
  0x9f   : > { %v4035_v49 = vld [vmem:[%s4697_s16 + $0x4] ss:$28 sps:$4 sm:$0xff]   ;;  %v4038_v51 = vld [vmem:[%s4697_s16 + $0xc] ss:$28 sps:$4 sm:$0xff]   ;;  %v4045_v7 = vld [vmem:[%s4697_s16 + $0x3c] ss:$28 sps:$4 sm:$0xff]  }
  0xa0   : > { %1537 = vmatpush1.bf16.msra.mxu0 %v3965_v18  ;;  %v4011_v50 = vld [vmem:[#allocation5 + $0x1b4] ss:$8 sps:$4 sm:$0xff]   ;;  %1560 = vmatprep.mubr.bf16.mxu0 %v4035_v49  ;;  %v4014_v53 = vld [vmem:[#allocation5 + $0x1b0] ss:$8 sps:$4 sm:$0xff]   ;;  %v4015_v54 = vld [vmem:[#allocation5 + $0xa4] ss:$8 sps:$4 sm:$0xff]  }
  0xa1   : > { %1668 = vmatpush1.bf16.msra.mxu1 %v3966_v19  ;;  %1538 = vmatprep.subr.bf16.mxu0 %v3967_v20  ;;  %v4017_v55 = vld [vmem:[#allocation5 + $0x1a4] ss:$8 sps:$4 sm:$0xff]   ;;  %v4019_v56 = vld [vmem:[#allocation5 + $0xa0] ss:$8 sps:$4 sm:$0xff]   ;;  %v4021_v58 = vld [vmem:[#allocation5 + $0x94] ss:$8 sps:$4 sm:$0xff]  }
  0xa2   : > { %1669 = vmatprep.subr.bf16.mxu1 %v3969_v21  ;;  %1691 = vmatprep.mubr.bf16.mxu1 %v4038_v51  ;;  %v4020_v57 = vld [vmem:[#allocation5 + $0x1a0] ss:$8 sps:$4 sm:$0xff]   ;;  %v4023_v59 = vld [vmem:[#allocation5 + $0x194] ss:$8 sps:$4 sm:$0xff]   ;;  %v4025_v60 = vld [vmem:[#allocation5 + $0x90] ss:$8 sps:$4 sm:$0xff]  }
  0xa3   : > { %v4026_v61 = vld [vmem:[#allocation5 + $0x190] ss:$8 sps:$4 sm:$0xff]   ;;  %v4027_v62 = vld [vmem:[#allocation5 + $0x84] ss:$8 sps:$4 sm:$0xff]   ;;  %v4031_v0 = vld [vmem:[#allocation5 + $0x80] ss:$8 sps:$4 sm:$0xff]  }
  0xa4   : > { %1539 = vmatpush1.bf16.msra.mxu0 %v3971_v22  ;;  %v4029_v63 = vld [vmem:[#allocation5 + $0x184] ss:$8 sps:$4 sm:$0xff]   ;;  %v4032_v1 = vld [vmem:[#allocation5 + $0x180] ss:$8 sps:$4 sm:$0xff]   ;;  %v4041_v2 = vld [vmem:[#allocation5 + $0x274] ss:$8 sps:$4 sm:$0xff]  }
  0xa5   : > { %1670 = vmatpush1.bf16.msra.mxu1 %v3972_v23  ;;  %1540 = vmatprep.subr.bf16.mxu0 %v3973_v24  ;;  %v4033_v3 = vld [vmem:[%s4697_s16] ss:$28 sps:$4 sm:$0xff]   ;;  %v4036_v4 = vld [vmem:[%s4697_s16 + $0x8] ss:$28 sps:$4 sm:$0xff]   ;;  %v4049_v11 = vld [vmem:[%s4697_s16 + $0x38] ss:$28 sps:$4 sm:$0xff]  }
  0xa6   : > { %1671 = vmatprep.subr.bf16.mxu1 %v3975_v25  ;;  %v4039_v5 = vld [vmem:[#allocation5 + $0x270] ss:$8 sps:$4 sm:$0xff]   ;;  %v4044_v6 = vld [vmem:[#allocation5 + $0x264] ss:$8 sps:$4 sm:$0xff]   ;;  %v4042_v9 = vld [vmem:[#allocation5 + $0x260] ss:$8 sps:$4 sm:$0xff]  }
  0xa7   : > { %v4047_v8 = vld [vmem:[%s4697_s16 + $0x44] ss:$28 sps:$4 sm:$0xff]   ;;  %v4054_v14 = vld [vmem:[%s4697_s16 + $0x74] ss:$28 sps:$4 sm:$0xff]   ;;  %v4056_v15 = vld [vmem:[%s4697_s16 + $0x7c] ss:$28 sps:$4 sm:$0xff]  }
  0xa8   : > { %1541 = vmatpush1.bf16.msra.mxu0 %v3977_v26  ;;  %v4053_v10 = vld [vmem:[#allocation5 + $0x254] ss:$8 sps:$4 sm:$0xff]   ;;  %v4051_v13 = vld [vmem:[#allocation5 + $0x250] ss:$8 sps:$4 sm:$0xff]   ;;  %v4060_v16 = vld [vmem:[#allocation5 + $0x244] ss:$8 sps:$4 sm:$0xff]  }
  0xa9   : > { %1672 = vmatpush1.bf16.msra.mxu1 %v3978_v27  ;;  %1542 = vmatprep.subr.bf16.mxu0 %v3979_v28  ;;  %v4050_v12 = vld [vmem:[%s4697_s16 + $0x40] ss:$28 sps:$4 sm:$0xff]   ;;  %v4061_v19 = vld [vmem:[%s4697_s16 + $0x70] ss:$28 sps:$4 sm:$0xff]   ;;  %v4062_v20 = vld [vmem:[%s4697_s16 + $0x78] ss:$28 sps:$4 sm:$0xff]  }
  0xaa   : > { %1673 = vmatprep.subr.bf16.mxu1 %v3981_v29  ;;  %v4058_v17 = vld [vmem:[#allocation5 + $0x240] ss:$8 sps:$4 sm:$0xff]   ;;  %v4065_v18 = vld [vmem:[#allocation5 + $0x234] ss:$8 sps:$4 sm:$0xff]   ;;  %v4063_v21 = vld [vmem:[#allocation5 + $0x230] ss:$8 sps:$4 sm:$0xff]  }
  0xab   : > { %v4066_v22 = vld [vmem:[%s4697_s16 + $0xac] ss:$28 sps:$4 sm:$0xff]   ;;  %v4068_v23 = vld [vmem:[%s4697_s16 + $0xb4] ss:$28 sps:$4 sm:$0xff]   ;;  %v4078_v29 = vld [vmem:[%s4697_s16 + $0xe4] ss:$28 sps:$4 sm:$0xff]  }
  0xac   : > { %1543 = vmatpush1.bf16.msra.mxu0 %v3983_v30  ;;  %v4074_v24 = vld [vmem:[#allocation5 + $0x224] ss:$8 sps:$4 sm:$0xff]   ;;  %v4072_v25 = vld [vmem:[#allocation5 + $0x220] ss:$8 sps:$4 sm:$0xff]   ;;  %v4077_v26 = vld [vmem:[#allocation5 + $0x214] ss:$8 sps:$4 sm:$0xff]  }
  0xad   : > { %1674 = vmatpush1.bf16.msra.mxu1 %v3984_v31  ;;  %1544 = vmatprep.subr.bf16.mxu0 %v3985_v32  ;;  %v4070_v27 = vld [vmem:[%s4697_s16 + $0xa8] ss:$28 sps:$4 sm:$0xff]   ;;  %v4071_v28 = vld [vmem:[%s4697_s16 + $0xb0] ss:$28 sps:$4 sm:$0xff]   ;;  %vm1497_vm0 = vcmask 130048   ;;  %s3829_s9 = smul.u32 76, %s4693_s13 }
  0xae   : > { %1675 = vmatprep.subr.bf16.mxu1 %v3987_v33  ;;  %v4080_v30 = vld [vmem:[%s4697_s16 + $0xec] ss:$28 sps:$4 sm:$0xff]   ;;  %v4082_v33 = vld [vmem:[%s4697_s16 + $0xe0] ss:$28 sps:$4 sm:$0xff]   ;;  %s3502_s15 = smul.u32 1216, %s4554_s23  ;;  %s3090_s29 = scalar_lea.sflag [#allocation4], %s4693_s13 }
  0xaf   : > { %v4075_v31 = vld [vmem:[#allocation5 + $0x210] ss:$8 sps:$4 sm:$0xff]   ;;  %v4086_v32 = vld [vmem:[#allocation5 + $0x204] ss:$8 sps:$4 sm:$0xff]   ;;  %v4119_v51 = vld [vmem:[#allocation5 + $0x2b4] ss:$8 sps:$4 sm:$0xff]  }
  0xb0   : > { %1545 = vmatpush2.bf16.msra.mxu0 %v3989_v34  ;;  %v4084_v34 = vld [vmem:[#allocation5 + $0x200] ss:$8 sps:$4 sm:$0xff]   ;;  %s5052_s14 = scalar_lea.vmem [#allocation13], %s3829_s9  ;;  %s5068_s24 = scalar_lea.hbm %s5125_s11, %s3502_s15 }
  0xb1   : > { %1676 = vmatpush2.bf16.msra.mxu1 %v3990_v35  ;;  %1546 = vmatprep.subr.bf16.mxu0 %v3991_v36  ;;  %v4095_v35 = vld [vmem:[#allocation5 + $0x2f4] ss:$8 sps:$4 sm:$0xff]   ;;  %p5170_p6 = scmp.ne.s32.totalorder %s5145_s21, 0  ;;  %s4470_s23 = smov [#allocation13]  }
  0xb2   : > { %1677 = vmatprep.subr.bf16.mxu1 %v3993_v37  ;;  %v4083_v36 = vld [vmem:[%s4697_s16 + $0xe8] ss:$28 sps:$4 sm:$0xff]   ;;  %v4087_v37 = vld [vmem:[%s4697_s16 + $0x11c] ss:$28 sps:$4 sm:$0xff]   ;;  %v4103_v49 = vld [vmem:[%s4697_s16 + $0x150] ss:$28 sps:$4 sm:$0xff]  }
  0xb3   : > { %s4383_s25 = sshll.u32 %s4470_s23, 4  ;;  %s4384_s25 = int_to_ptr.vmem [resolvable:$false] %s4383_s25 }
  0xb4   : > { %1547 = vmatpush2.bf16.msra.mxu0 %v3995_v38  ;;  %v4089_v38 = vld [vmem:[%s4697_s16 + $0x124] ss:$28 sps:$4 sm:$0xff]   ;;  %s4385_s12 = scalar_lea.vmem %s4384_s25, 2432 }
  0xb5   : > { %1678 = vmatpush2.bf16.msra.mxu1 %v3996_v39  ;;  %1548 = vmatprep.subr.bf16.mxu0 %v3997_v40  ;;  %v4093_v39 = vld [vmem:[#allocation5 + $0x2f0] ss:$8 sps:$4 sm:$0xff]   ;;  %v4098_v40 = vld [vmem:[#allocation5 + $0x2e4] ss:$8 sps:$4 sm:$0xff]  }
  0xb6   : > { %1679 = vmatprep.subr.bf16.mxu1 %v3999_v41  ;;  %v4096_v41 = vld [vmem:[#allocation5 + $0x2e0] ss:$8 sps:$4 sm:$0xff]  }
  0xb8   : > { %1549 = vmatpush2.bf16.msra.mxu0 %v4001_v42  ;;  %v4091_v42 = vld [vmem:[%s4697_s16 + $0x118] ss:$28 sps:$4 sm:$0xff]  }
  0xb9   : > { %1680 = vmatpush2.bf16.msra.mxu1 %v4002_v43  ;;  %1550 = vmatprep.subr.bf16.mxu0 %v4003_v44  ;;  %v4107_v43 = vld [vmem:[#allocation5 + $0x2d4] ss:$8 sps:$4 sm:$0xff]  }
  0xba   : > { %1681 = vmatprep.subr.bf16.mxu1 %v4005_v45  ;;  %v4092_v44 = vld [vmem:[%s4697_s16 + $0x120] ss:$28 sps:$4 sm:$0xff]   ;;  %v4099_v45 = vld [vmem:[%s4697_s16 + $0x154] ss:$28 sps:$4 sm:$0xff]  }
  0xbc   : > { %1551 = vmatpush2.bf16.msra.mxu0 %v4007_v46  ;;  %v4101_v46 = vld [vmem:[%s4697_s16 + $0x15c] ss:$28 sps:$4 sm:$0xff]  }
  0xbd   : > { %1682 = vmatpush2.bf16.msra.mxu1 %v4008_v47  ;;  %1552 = vmatprep.subr.bf16.mxu0 %v4009_v48  ;;  %v4105_v47 = vld [vmem:[#allocation5 + $0x2d0] ss:$8 sps:$4 sm:$0xff]   ;;  %v4114_v48 = vld [vmem:[#allocation5 + $0x2c4] ss:$8 sps:$4 sm:$0xff]  }
  0xbe   : > { %1683 = vmatprep.subr.bf16.mxu1 %v4011_v50  ;;  %v4112_v50 = vld [vmem:[#allocation5 + $0x2c0] ss:$8 sps:$4 sm:$0xff]  }
  0xc0   : > { %1553 = vmatpush2.bf16.msra.mxu0 %v4013_v52  ;;  %v4104_v52 = vld [vmem:[%s4697_s16 + $0x158] ss:$28 sps:$4 sm:$0xff]  }
  0xc1   : > { %1684 = vmatpush2.bf16.msra.mxu1 %v4014_v53  ;;  %1554 = vmatprep.subr.bf16.mxu0 %v4015_v54  ;;  %v4108_v53 = vld [vmem:[%s4697_s16 + $0x18c] ss:$28 sps:$4 sm:$0xff]   ;;  %v4110_v54 = vld [vmem:[%s4697_s16 + $0x194] ss:$28 sps:$4 sm:$0xff]  }
  0xc2   : > { %1685 = vmatprep.subr.bf16.mxu1 %v4017_v55  ;;  %v4117_v55 = vld [vmem:[#allocation5 + $0x2b0] ss:$8 sps:$4 sm:$0xff]  }
  0xc4   : > { %1555 = vmatpush2.bf16.msra.mxu0 %v4019_v56  ;;  %v4128_v56 = vld [vmem:[#allocation5 + $0x2a4] ss:$8 sps:$4 sm:$0xff]  }
  0xc5   : > { %1686 = vmatpush2.bf16.msra.mxu1 %v4020_v57  ;;  %1556 = vmatprep.subr.bf16.mxu0 %v4021_v58  ;;  %v4126_v57 = vld [vmem:[#allocation5 + $0x2a0] ss:$8 sps:$4 sm:$0xff]   ;;  %v4131_v58 = vld [vmem:[#allocation5 + $0x294] ss:$8 sps:$4 sm:$0xff]  }
  0xc6   : > { %1687 = vmatprep.subr.bf16.mxu1 %v4023_v59  ;;  %v4115_v59 = vld [vmem:[%s4697_s16 + $0x188] ss:$28 sps:$4 sm:$0xff]  }
  0xc8   : > { %1557 = vmatpush2.bf16.msra.mxu0 %v4025_v60  ;;  %v4116_v60 = vld [vmem:[%s4697_s16 + $0x190] ss:$28 sps:$4 sm:$0xff]  }
  0xc9   : > { %1688 = vmatpush2.bf16.msra.mxu1 %v4026_v61  ;;  %1558 = vmatprep.subr.bf16.mxu0 %v4027_v62  ;;  %v4120_v61 = vld [vmem:[%s4697_s16 + $0x1c4] ss:$28 sps:$4 sm:$0xff]   ;;  %v4122_v62 = vld [vmem:[%s4697_s16 + $0x1cc] ss:$28 sps:$4 sm:$0xff]  }
  0xca   : > { %1689 = vmatprep.subr.bf16.mxu1 %v4029_v63  ;;  %v4129_v63 = vld [vmem:[#allocation5 + $0x290] ss:$8 sps:$4 sm:$0xff]  }
  0xcc   : > { %1559 = vmatpush2.bf16.msra.mxu0 %v4031_v0  ;;  %v4138_v0 = vld [vmem:[#allocation5 + $0x284] ss:$8 sps:$4 sm:$0xff]  }
  0xcd   : > { %1690 = vmatpush2.bf16.msra.mxu1 %v4032_v1  ;;  %1790 = vmatprep.subr.bf16.mxu0 %v4041_v2  ;;  %v554_v1 = vld [vmem:[%s4697_s16 + $0x1f8] sm:$0xff] }
  0xce   : > { %3794 = vmatprep.subr.bf16.mxu1 %v4041_v2  ;;  %v555_v2 = vld [vmem:[%s4697_s16 + $0x200] sm:$0xff] }
  0xcf   : > { %1561 = vmatmul.mubr.bf16.vlgmr.msra.gmra.mxu0 %v4033_v3  ;;  %v4136_v3 = vld [vmem:[#allocation5 + $0x280] ss:$8 sps:$4 sm:$0xff]  }
  0xd0   : > { %1692 = vmatmul.mubr.bf16.vlgmr.msra.gmra.mxu1 %v4036_v4  ;;  %1570 = vmatprep.mubr.bf16.mxu0 %v4045_v7  ;;  %v4147_v4 = vld [vmem:[#allocation5 + $0x304] ss:$8 sps:$4 sm:$0xff]   ;;  %v3303_v7 = vcombine.high %v554_v1, %v554_v1 }
  0xd1   : > { %3810 = vmatpush1.bf16.msra.mxu1 %v4039_v5  ;;  %1701 = vmatprep.mubr.bf16.mxu1 %v4047_v8  ;;  %v3305_v8 = vcombine.high %v555_v2, %v555_v2 }
  0xd2   : > { %3795 = vmatprep.subr.bf16.mxu1 %v4044_v6  ;;  %1791 = vmatpush1.bf16.msra.mxu0 %v4039_v5  ;;  %v4124_v5 = vld [vmem:[%s4697_s16 + $0x1c0] ss:$28 sps:$4 sm:$0xff]  }
  0xd3   : > { %1792 = vmatprep.subr.bf16.mxu0 %v4044_v6  ;;  %v4125_v6 = vld [vmem:[%s4697_s16 + $0x1c8] ss:$28 sps:$4 sm:$0xff]  }
  0xd5   : > { %3811 = vmatpush1.bf16.msra.mxu1 %v4042_v9 }
  0xd6   : > { %3796 = vmatprep.subr.bf16.mxu1 %v4053_v10  ;;  %1793 = vmatpush1.bf16.msra.mxu0 %v4042_v9  ;;  %v4141_v9 = vld [vmem:[%s4697_s16 + $0x14] ss:$28 sps:$4 sm:$0xff]  }
  0xd7   : > { %1571 = vmatmul.mubr.bf16.gmra.mxu0 %v4049_v11  ;;  %1794 = vmatprep.subr.bf16.mxu0 %v4053_v10  ;;  %v4144_v10 = vld [vmem:[%s4697_s16 + $0x1d4] ss:$28 sps:$4 sm:$0xff]   ;;  %v3302_v11 = vcombine.low %v554_v1, %v554_v1 }
  0xd8   : > { %1702 = vmatmul.mubr.bf16.gmra.mxu1 %v4050_v12  ;;  %1580 = vmatprep.mubr.bf16.mxu0 %v4054_v14  ;;  %v3304_v12 = vcombine.low %v555_v2, %v555_v2  ;;  %v4139_v14 = vld [vmem:[%s4697_s16 + $0x10] ss:$28 sps:$4 sm:$0xff]  }
  0xd9   : > { %3812 = vmatpush1.bf16.msra.mxu1 %v4051_v13  ;;  %1711 = vmatprep.mubr.bf16.mxu1 %v4056_v15  ;;  %v4142_v15 = vld [vmem:[%s4697_s16 + $0x1d0] ss:$28 sps:$4 sm:$0xff]  }
  0xda   : > { %3797 = vmatprep.subr.bf16.mxu1 %v4060_v16  ;;  %1795 = vmatpush1.bf16.msra.mxu0 %v4051_v13  ;;  %v556_v13 = vld [vmem:[%s4697_s16 + $0x208] sm:$0xff] }
  0xdb   : > { %1796 = vmatprep.subr.bf16.mxu0 %v4060_v16  ;;  %v4145_v16 = vld [vmem:[#allocation5 + $0x300] ss:$8 sps:$4 sm:$0xff]  }
  0xdd   : > { %3813 = vmatpush1.bf16.msra.mxu1 %v4058_v17 }
  0xde   : > { %3798 = vmatprep.subr.bf16.mxu1 %v4065_v18  ;;  %1797 = vmatpush1.bf16.msra.mxu0 %v4058_v17  ;;  %v4148_v17 = vld [vmem:[%s4697_s16 + $0x4c] ss:$28 sps:$4 sm:$0xff]  }
  0xdf   : > { %1581 = vmatmul.mubr.bf16.gmra.mxu0 %v4061_v19  ;;  %1798 = vmatprep.subr.bf16.mxu0 %v4065_v18  ;;  %v3307_v18 = vcombine.high %v556_v13, %v556_v13  ;;  %v4151_v19 = vld [vmem:[%s4697_s16 + $0x48] ss:$28 sps:$4 sm:$0xff]  }
  0xe0   : > { %1712 = vmatmul.mubr.bf16.gmra.mxu1 %v4062_v20  ;;  %1590 = vmatprep.mubr.bf16.mxu0 %v4066_v22  ;;  %v3306_v20 = vcombine.low %v556_v13, %v556_v13  ;;  %v4469_v22 = vmov 0  }
  0xe1   : > { %3814 = vmatpush1.bf16.msra.mxu1 %v4063_v21  ;;  %1721 = vmatprep.mubr.bf16.mxu1 %v4068_v23  ;;  %v4155_v23 = vld [vmem:[%s4697_s16 + $0x80] ss:$28 sps:$4 sm:$0xff]  }
  0xe2   : > { %3799 = vmatprep.subr.bf16.mxu1 %v4074_v24  ;;  %1799 = vmatpush1.bf16.msra.mxu0 %v4063_v21  ;;  %v4153_v21 = vld [vmem:[%s4697_s16 + $0x84] ss:$28 sps:$4 sm:$0xff]  }
  0xe3   : > { %1800 = vmatprep.subr.bf16.mxu0 %v4074_v24  ;;  %v4156_v24 = vld [vmem:[%s4697_s16 + $0x18] ss:$28 sps:$4 sm:$0xff]  }
  0xe5   : > { %3815 = vmatpush1.bf16.msra.mxu1 %v4072_v25 }
  0xe6   : > { %3800 = vmatprep.subr.bf16.mxu1 %v4077_v26  ;;  %1801 = vmatpush1.bf16.msra.mxu0 %v4072_v25  ;;  %v4157_v25 = vld [vmem:[%s4697_s16 + $0xbc] ss:$28 sps:$4 sm:$0xff]  }
  0xe7   : > { %1591 = vmatmul.mubr.bf16.gmra.mxu0 %v4070_v27  ;;  %1802 = vmatprep.subr.bf16.mxu0 %v4077_v26  ;;  %v4159_v26 = vld [vmem:[%s4697_s16 + $0xb8] ss:$28 sps:$4 sm:$0xff]   ;;  %v4160_v27 = vld [vmem:[%s4697_s16 + $0x50] ss:$28 sps:$4 sm:$0xff]  }
  0xe8   : > { %1722 = vmatmul.mubr.bf16.gmra.mxu1 %v4071_v28  ;;  %1600 = vmatprep.mubr.bf16.mxu0 %v4078_v29  ;;  %v4161_v28 = vld [vmem:[%s4697_s16 + $0xf4] ss:$28 sps:$4 sm:$0xff]  }
  0xe9   : > { %1731 = vmatprep.mubr.bf16.mxu1 %v4080_v30  ;;  %3816 = vmatpush1.bf16.msra.mxu1 %v4075_v31  ;;  %v4163_v29 = vld [vmem:[%s4697_s16 + $0xf0] ss:$28 sps:$4 sm:$0xff]   ;;  %v4164_v30 = vld [vmem:[%s4697_s16 + $0x88] ss:$28 sps:$4 sm:$0xff]  }
  0xea   : > { %3801 = vmatprep.subr.bf16.mxu1 %v4086_v32  ;;  %1803 = vmatpush1.bf16.msra.mxu0 %v4075_v31  ;;  %v4165_v31 = vld [vmem:[%s4697_s16 + $0x12c] ss:$28 sps:$4 sm:$0xff]  }
  0xeb   : > { %1804 = vmatprep.subr.bf16.mxu0 %v4086_v32  ;;  %v4181_v32 = vld [vmem:[#allocation7 + $0x78] sm:$0xff]  }
  0xed   : > { %3817 = vmatpush1.bf16.msra.mxu1 %v4084_v34 }
  0xee   : > { %3802 = vmatprep.subr.bf16.mxu1 %v4095_v35  ;;  %1805 = vmatpush1.bf16.msra.mxu0 %v4084_v34  ;;  %v4167_v34 = vld [vmem:[%s4697_s16 + $0x128] ss:$28 sps:$4 sm:$0xff]  }
  0xef   : > { %1601 = vmatmul.mubr.bf16.gmra.mxu0 %v4082_v33  ;;  %1806 = vmatprep.subr.bf16.mxu0 %v4095_v35  ;;  %v4182_v33 = vld [vmem:[#allocation7 + $0x38] sm:$0xff]  }
  0xf0   : > { %1732 = vmatmul.mubr.bf16.gmra.mxu1 %v4083_v36  ;;  %1610 = vmatprep.mubr.bf16.mxu0 %v4087_v37  ;;  %v4168_v35 = vld [vmem:[%s4697_s16 + $0xc0] ss:$28 sps:$4 sm:$0xff]   ;;  %v4183_v37 = vld [vmem:[#allocation7 + $0x70] sm:$0xff]  }
  0xf1   : > { %1741 = vmatprep.mubr.bf16.mxu1 %v4089_v38  ;;  %3818 = vmatpush2.bf16.msra.mxu1 %v4093_v39  ;;  %v4169_v36 = vld [vmem:[%s4697_s16 + $0x164] ss:$28 sps:$4 sm:$0xff]   ;;  %v4184_v38 = vld [vmem:[#allocation7 + $0x30] sm:$0xff]  }
  0xf2   : > { %3803 = vmatprep.subr.bf16.mxu1 %v4098_v40  ;;  %1807 = vmatpush2.bf16.msra.mxu0 %v4093_v39  ;;  %v4171_v39 = vld [vmem:[%s4697_s16 + $0x160] ss:$28 sps:$4 sm:$0xff]  }
  0xf3   : > { %1808 = vmatprep.subr.bf16.mxu0 %v4098_v40  ;;  %v4172_v40 = vld [vmem:[%s4697_s16 + $0xf8] ss:$28 sps:$4 sm:$0xff]  }
  0xf5   : > { %3819 = vmatpush2.bf16.msra.mxu1 %v4096_v41 }
  0xf6   : > { %3804 = vmatprep.subr.bf16.mxu1 %v4107_v43  ;;  %1809 = vmatpush2.bf16.msra.mxu0 %v4096_v41  ;;  %v4173_v41 = vld [vmem:[%s4697_s16 + $0x19c] ss:$28 sps:$4 sm:$0xff]  }
  0xf7   : > { %1611 = vmatmul.mubr.bf16.gmra.mxu0 %v4091_v42  ;;  %1810 = vmatprep.subr.bf16.mxu0 %v4107_v43  ;;  %v4185_v42 = vld [vmem:[#allocation7 + $0x68] sm:$0xff]  }
  0xf8   : > { %1742 = vmatmul.mubr.bf16.gmra.mxu1 %v4092_v44  ;;  %1620 = vmatprep.mubr.bf16.mxu0 %v4099_v45  ;;  %v4186_v43 = vld [vmem:[#allocation7 + $0x28] sm:$0xff]   ;;  %v4175_v44 = vld [vmem:[%s4697_s16 + $0x198] ss:$28 sps:$4 sm:$0xff]  }
  0xf9   : > { %1751 = vmatprep.mubr.bf16.mxu1 %v4101_v46  ;;  %3820 = vmatpush2.bf16.msra.mxu1 %v4105_v47  ;;  %v4176_v45 = vld [vmem:[%s4697_s16 + $0x130] ss:$28 sps:$4 sm:$0xff]   ;;  %v4187_v46 = vld [vmem:[#allocation7 + $0x60] sm:$0xff]  }
  0xfa   : > { %3805 = vmatprep.subr.bf16.mxu1 %v4114_v48  ;;  %1811 = vmatpush2.bf16.msra.mxu0 %v4105_v47  ;;  %v4188_v47 = vld [vmem:[#allocation7 + $0x20] sm:$0xff]  }
  0xfb   : > { %1812 = vmatprep.subr.bf16.mxu0 %v4114_v48  ;;  %v4177_v48 = vld [vmem:[%s4697_s16 + $0x168] ss:$28 sps:$4 sm:$0xff]  }
  0xfd   : > { %3821 = vmatpush2.bf16.msra.mxu1 %v4112_v50 }
  0xfe   : > { %3806 = vmatprep.subr.bf16.mxu1 %v4119_v51  ;;  %1813 = vmatpush2.bf16.msra.mxu0 %v4112_v50  ;;  %v4190_v50 = vld [vmem:[#allocation7 + $0x18] sm:$0xff]  }
  0xff   : > { %1621 = vmatmul.mubr.bf16.gmra.mxu0 %v4103_v49  ;;  %1814 = vmatprep.subr.bf16.mxu0 %v4119_v51  ;;  %v4189_v49 = vld [vmem:[#allocation7 + $0x58] sm:$0xff]  }
 0x100   : > { %1752 = vmatmul.mubr.bf16.gmra.mxu1 %v4104_v52  ;;  %1630 = vmatprep.mubr.bf16.mxu0 %v4108_v53  ;;  %v4178_v51 = vld [vmem:[%s4697_s16 + $0x1a0] ss:$28 sps:$4 sm:$0xff]   ;;  %v4191_v52 = vld [vmem:[#allocation7 + $0x50] sm:$0xff]  }
 0x101   : > { %1761 = vmatprep.mubr.bf16.mxu1 %v4110_v54  ;;  %3822 = vmatpush2.bf16.msra.mxu1 %v4117_v55  ;;  %v4192_v53 = vld [vmem:[#allocation7 + $0x10] sm:$0xff]  }
 0x102   : > { %3807 = vmatprep.subr.bf16.mxu1 %v4128_v56  ;;  %1815 = vmatpush2.bf16.msra.mxu0 %v4117_v55  ;;  %v4179_v54 = vld [vmem:[%s4697_s16 + $0x1d8] ss:$28 sps:$4 sm:$0xff]   ;;  %v4193_v55 = vld [vmem:[#allocation7 + $0x48] sm:$0xff]  }
 0x103   : > { %1816 = vmatprep.subr.bf16.mxu0 %v4128_v56  ;;  %v4194_v56 = vld [vmem:[#allocation7 + $0x8] sm:$0xff]  }
 0x105   : > { %3823 = vmatpush2.bf16.msra.mxu1 %v4126_v57 }
 0x106   : > { %3808 = vmatprep.subr.bf16.mxu1 %v4131_v58  ;;  %1817 = vmatpush2.bf16.msra.mxu0 %v4126_v57  ;;  %v4180_v57 = vld [vmem:[%s4697_s16 + $0x210] ss:$0 sps:$4 sm:$0xff]   ;;  %s3103_s16 = sshll.u32 %s5052_s14, 4  ;;  %s5070_s16 = int_to_ptr.vmem [resolvable:$true] %s3103_s16 }
 0x107   : > { %1631 = vmatmul.mubr.bf16.gmra.mxu0 %v4115_v59  ;;  %1818 = vmatprep.subr.bf16.mxu0 %v4131_v58  ;;  %v4195_v58 = vld [vmem:[#allocation7 + $0x40] sm:$0xff]   ;;  %s4379_s27 = scalar_lea.vmem %s5070_s16, 1216  ;;  %p4386_p7 = scmp.lt.s32.totalorder %s5070_s16, %s4384_s25 }
 0x108   : > { %1762 = vmatmul.mubr.bf16.gmra.mxu1 %v4116_v60  ;;  %1640 = vmatprep.mubr.bf16.mxu0 %v4120_v61  ;;  %v4196_v59 = vld [vmem:[#allocation7] sm:$0xff]   ;;  %v658_v60 = vlaneseq  ;;  %p4380_p12 = scmp.ne.s32.totalorder %s5070_s16, %s4379_s27  ;;  %p4387_p1 = scmp.lt.s32.totalorder %s4385_s12, %s4379_s27 }
 0x109   : > { %1771 = vmatprep.mubr.bf16.mxu1 %v4122_v62  ;;  %3824 = vmatpush2.bf16.msra.mxu1 %v4129_v63 }
 0x10a   : > { %3809 = vmatprep.subr.bf16.mxu1 %v4138_v0  ;;  %1819 = vmatpush2.bf16.msra.mxu0 %v4129_v63  ;;  %v659_v61 = vshrl.u32 %v658_v60, 7  ;;  %v656_v63 = vld [vmem:[%s5116_s2] sm:$0x3]  ;;  %p4381_p0 = pnand %p4380_p12, %p5170_p6  ;;  %p4388_p11 = por %p4387_p1, %p4386_p7 }
 0x10b   : > { %1820 = vmatprep.subr.bf16.mxu0 %v4138_v0 }
 0x10c   : > { %v660_v62 = vsub.s32 0, %v659_v61  ;;  %v664_v0 = vsub.s32 1, %v659_v61  ;;  %p4382_p2 = pneg %p4381_p0 }
 0x10d   : > { %3825 = vmatpush2.bf16.msra.mxu1 %v4136_v3 }
 0x10e   : > { %1935 = vmatprep.subr.bf16.mxu1 %v4147_v4  ;;  %1821 = vmatpush2.bf16.msra.mxu0 %v4136_v3  ;;  %v4805_v1 = vrot.slane %v656_v63, %v660_v62  ;;  %v4807_v2 = vrot.slane %v656_v63, %v664_v0  ;;  %p4389_p3 = pnand %p4388_p11, %p4382_p2 }
 0x10f   : > { %1641 = vmatmul.mubr.bf16.gmra.mxu0 %v4124_v5  ;;  %3556 = vmatprep.subr.bf16.mxu0 %v4181_v32 }
 0x110   : > { %1772 = vmatmul.mubr.bf16.gmra.mxu1 %v4125_v6  ;;  %1650 = vmatprep.mubr.bf16.mxu0 %v3303_v7 }
 0x111   : > { %1781 = vmatprep.mubr.bf16.mxu1 %v3305_v8 }
 0x117   : > { %1651 = vmatmul.mubr.bf16.gmra.mxu0 %v3302_v11 }
 0x118   : > { %1782 = vmatmul.mubr.bf16.gmra.mxu1 %v3304_v12  ;;  %1822 = vmatprep.mubr.bf16.mxu0 %v4141_v9 }
 0x119   : > { %1902 = vmatprep.mubr.bf16.mxu1 %v4144_v10 }
 0x11f   : > { %1823 = vmatmul.mubr.bf16.vlgmr.msra.gmra.mxu0 %v4139_v14 }
 0x120   : > { %1903 = vmatmul.mubr.bf16.vlgmr.msra.gmra.mxu1 %v4142_v15  ;;  %1832 = vmatprep.mubr.bf16.mxu0 %v4148_v17 }
 0x121   : > { %1936 = vmatpush1.bf16.msra.mxu1 %v4145_v16  ;;  %1912 = vmatprep.mubr.bf16.mxu1 %v3307_v18 }
 0x122   : > { %3557 = vmatpush3.bf16.msra.mxu0 %v4182_v33 }
 0x123   : > { %3558 = vmatprep.subr.bf16.mxu0 %v4183_v37 }
 0x126   : > { %3559 = vmatpush3.bf16.msra.mxu0 %v4184_v38 }
 0x127   : > { %1833 = vmatmul.mubr.bf16.gmra.mxu0 %v4151_v19  ;;  %3560 = vmatprep.subr.bf16.mxu0 %v4185_v42 }
 0x128   : > { %1913 = vmatmul.mubr.bf16.gmra.mxu1 %v3306_v20  ;;  %1842 = vmatprep.mubr.bf16.mxu0 %v4153_v21 }
 0x129   : > { %1953 = vmatprep.mubr.bf16.mxu1 %v4469_v22 }
 0x12a   : > { %3561 = vmatpush3.bf16.msra.mxu0 %v4186_v43 }
 0x12b   : > { %3562 = vmatprep.subr.bf16.mxu0 %v4187_v46 }
 0x12e   : > { %3563 = vmatpush3.bf16.msra.mxu0 %v4188_v47 }
 0x12f   : > { %1843 = vmatmul.mubr.bf16.gmra.mxu0 %v4155_v23  ;;  %3564 = vmatprep.subr.bf16.mxu0 %v4189_v49 }
 0x130   : > { %3407 = vmatmul.mubr.msk.bf16.vlgmr.msra.gmra.mxu1 %vm1497_vm0, %v4156_v24  ;;  %1852 = vmatprep.mubr.bf16.mxu0 %v4157_v25 }
 0x131   : > { %1963 = vmatprep.mubr.bf16.mxu1 %v4469_v22 }
 0x132   : > { %3565 = vmatpush3.bf16.msra.mxu0 %v4190_v50 }
 0x133   : > { %3566 = vmatprep.subr.bf16.mxu0 %v4191_v52 }
 0x136   : > { %3567 = vmatpush3.bf16.msra.mxu0 %v4192_v53 }
 0x137   : > { %1853 = vmatmul.mubr.bf16.gmra.mxu0 %v4159_v26  ;;  %3568 = vmatprep.subr.bf16.mxu0 %v4193_v55 }
 0x138   : > { %3408 = vmatmul.mubr.msk.bf16.gmra.mxu1 %vm1497_vm0, %v4160_v27  ;;  %1862 = vmatprep.mubr.bf16.mxu0 %v4161_v28 }
 0x139   : > { %1973 = vmatprep.mubr.bf16.mxu1 %v4469_v22 }
 0x13a   : > { %3569 = vmatpush3.bf16.msra.mxu0 %v4194_v56 }
 0x13b   : > { %3570 = vmatprep.subr.bf16.mxu0 %v4195_v58 }
 0x13e   : > { %3571 = vmatpush3.bf16.msra.mxu0 %v4196_v59 }
 0x13f   : > { %1863 = vmatmul.mubr.bf16.gmra.mxu0 %v4163_v29 }
 0x140   : > { %3409 = vmatmul.mubr.msk.bf16.gmra.mxu1 %vm1497_vm0, %v4164_v30  ;;  %1872 = vmatprep.mubr.bf16.mxu0 %v4165_v31 }
 0x141   : > { %1983 = vmatprep.mubr.bf16.mxu1 %v4469_v22 }
 0x147   : > { %1873 = vmatmul.mubr.bf16.gmra.mxu0 %v4167_v34 }
 0x148   : > { %3410 = vmatmul.mubr.msk.bf16.gmra.mxu1 %vm1497_vm0, %v4168_v35  ;;  %1882 = vmatprep.mubr.bf16.mxu0 %v4169_v36 }
 0x149   : > { %1993 = vmatprep.mubr.bf16.mxu1 %v4469_v22 }
 0x14f   : > { %1883 = vmatmul.mubr.bf16.gmra.mxu0 %v4171_v39 }
 0x150   : > { %3411 = vmatmul.mubr.msk.bf16.gmra.mxu1 %vm1497_vm0, %v4172_v40  ;;  %1892 = vmatprep.mubr.bf16.mxu0 %v4173_v41 }
 0x151   : > { %2003 = vmatprep.mubr.bf16.mxu1 %v4469_v22 }
 0x157   : > { %1893 = vmatmul.mubr.bf16.gmra.mxu0 %v4175_v44 }
 0x158   : > { %3412 = vmatmul.mubr.msk.bf16.gmra.mxu1 %vm1497_vm0, %v4176_v45 }
 0x159   : > { %2013 = vmatprep.mubr.bf16.mxu1 %v4469_v22 }
 0x160   : > { %3413 = vmatmul.mubr.msk.bf16.gmra.mxu1 %vm1497_vm0, %v4177_v48 }
 0x161   : > { %2023 = vmatprep.mubr.bf16.mxu1 %v4469_v22 }
 0x168   : > { %3414 = vmatmul.mubr.msk.bf16.gmra.mxu1 %vm1497_vm0, %v4178_v51 }
 0x169   : > { %2033 = vmatprep.mubr.bf16.mxu1 %v4469_v22 }
 0x170   : > { %3415 = vmatmul.mubr.msk.bf16.gmra.mxu1 %vm1497_vm0, %v4179_v54 }
 0x171   : > { %2043 = vmatprep.mubr.bf16.mxu1 %v4469_v22 }
 0x178   : > { %3416 = vmatmul.mubr.msk.bf16.gmra.mxu1 %vm1497_vm0, %v4180_v57 }
 0x18f   : > { %v1562_v3 = vpop.f32.mrf.mxu0 }
 0x190   : > { %v1693_v4 = vpop.f32.mrf.mxu1  ;;  %v1563_v5 = vadd.f32 %v1562_v3, %v4805_v1 }
 0x191   : > { %v1564_v6 = vpop.f32.mrf.mxu0 }
 0x192   : > { %v1695_v7 = vpop.f32.mrf.mxu1  ;;  %v4810_v8 = vadd.f32 %v1693_v4, %v1563_v5  ;;  %v1565_v9 = vadd.f32 %v1564_v6, %v4807_v2 }
 0x193   : > { %v1566_v10 = vpop.f32.mrf.mxu0 }
 0x194   : > { %v1697_v11 = vpop.f32.mrf.mxu1  ;;  %v4813_v12 = vadd.f32 %v1695_v7, %v1565_v9  ;;  %v1567_v13 = vadd.f32 %v1566_v10, %v4805_v1 }
 0x195   : > { %v4816_v14 = vpop.f32.mrf.mxu0 }
 0x196   : > { %v4818_v15 = vpop.f32.mrf.mxu1  ;;  %v4820_v16 = vadd.f32 %v1697_v11, %v1567_v13 }
 0x197   : > { %v1572_v17 = vpop.f32.mrf.mxu0 }
 0x198   : > { %v1703_v18 = vpop.f32.mrf.mxu1  ;;  %v1573_v19 = vadd.f32 %v1572_v17, %v4805_v1 }
 0x199   : > { %v1574_v20 = vpop.f32.mrf.mxu0 }
 0x19a   : > { %v1705_v21 = vpop.f32.mrf.mxu1  ;;  %v4823_v22 = vadd.f32 %v1703_v18, %v1573_v19  ;;  %v1575_v23 = vadd.f32 %v1574_v20, %v4807_v2 }
 0x19b   : > { %v1576_v24 = vpop.f32.mrf.mxu0 }
 0x19c   : > { %v1707_v25 = vpop.f32.mrf.mxu1  ;;  %v4826_v26 = vadd.f32 %v1705_v21, %v1575_v23  ;;  %v1577_v27 = vadd.f32 %v1576_v24, %v4805_v1 }
 0x19d   : > { %v4829_v28 = vpop.f32.mrf.mxu0 }
 0x19e   : > { %v4831_v29 = vpop.f32.mrf.mxu1  ;;  %v4833_v30 = vadd.f32 %v1707_v25, %v1577_v27 }
 0x19f   : > { %v1582_v31 = vpop.f32.mrf.mxu0 }
 0x1a0   : > { %v1713_v32 = vpop.f32.mrf.mxu1  ;;  %v1583_v33 = vadd.f32 %v1582_v31, %v4805_v1 }
 0x1a1   : > { %v1584_v34 = vpop.f32.mrf.mxu0 }
 0x1a2   : > { %v1715_v35 = vpop.f32.mrf.mxu1  ;;  %v4836_v36 = vadd.f32 %v1713_v32, %v1583_v33  ;;  %v1585_v37 = vadd.f32 %v1584_v34, %v4807_v2 }
 0x1a3   : > { %v1586_v38 = vpop.f32.mrf.mxu0 }
 0x1a4   : > { %v1717_v39 = vpop.f32.mrf.mxu1  ;;  %v4839_v40 = vadd.f32 %v1715_v35, %v1585_v37  ;;  %v1587_v41 = vadd.f32 %v1586_v38, %v4805_v1 }
 0x1a5   : > { %v4842_v42 = vpop.f32.mrf.mxu0 }
 0x1a6   : > { %v4844_v43 = vpop.f32.mrf.mxu1  ;;  %v4846_v44 = vadd.f32 %v1717_v39, %v1587_v41 }
 0x1a7   : > { %v1592_v45 = vpop.f32.mrf.mxu0 }
 0x1a8   : > { %v1723_v46 = vpop.f32.mrf.mxu1  ;;  %v1593_v47 = vadd.f32 %v1592_v45, %v4805_v1 }
 0x1a9   : > { %v1594_v48 = vpop.f32.mrf.mxu0 }
 0x1aa   : > { %v1725_v49 = vpop.f32.mrf.mxu1  ;;  %v4849_v50 = vadd.f32 %v1723_v46, %v1593_v47  ;;  %v1595_v51 = vadd.f32 %v1594_v48, %v4807_v2 }
 0x1ab   : > { %v1596_v52 = vpop.f32.mrf.mxu0 }
 0x1ac   : > { %v1727_v53 = vpop.f32.mrf.mxu1  ;;  %v4852_v54 = vadd.f32 %v1725_v49, %v1595_v51  ;;  %v1597_v55 = vadd.f32 %v1596_v52, %v4805_v1 }
 0x1ad   : > { %v4855_v56 = vpop.f32.mrf.mxu0 }
 0x1ae   : > { %v4857_v57 = vpop.f32.mrf.mxu1  ;;  %v4859_v58 = vadd.f32 %v1727_v53, %v1597_v55 }
 0x1af   : > { %v1602_v59 = vpop.f32.mrf.mxu0 }
 0x1b0   : > { %v1733_v60 = vpop.f32.mrf.mxu1  ;;  %v1603_v61 = vadd.f32 %v1602_v59, %v4805_v1 }
 0x1b1   : > { %v1604_v62 = vpop.f32.mrf.mxu0 }
 0x1b2   : > { %v1735_v63 = vpop.f32.mrf.mxu1  ;;  %v4862_v0 = vadd.f32 %v1733_v60, %v1603_v61  ;;  %v1605_v3 = vadd.f32 %v1604_v62, %v4807_v2  ;;  %v4197_v60 = vld [vmem:[#allocation8 + $0x38] sm:$0xff]   ;;  %v4198_v61 = vld [vmem:[#allocation8 + $0x30] sm:$0xff]  }
 0x1b3   : > { %v1606_v4 = vpop.f32.mrf.mxu0  ;;  %3686 = vmatprep.subr.bf16.mxu1 %v4197_v60 }
 0x1b4   : > { %v1737_v5 = vpop.f32.mrf.mxu1  ;;  %v4865_v6 = vadd.f32 %v1735_v63, %v1605_v3  ;;  %v1607_v7 = vadd.f32 %v1606_v4, %v4805_v1  ;;  %3687 = vmatpush3.bf16.msra.mxu1 %v4197_v60 }
 0x1b5   : > { %v4868_v9 = vpop.f32.mrf.mxu0  ;;  %3688 = vmatprep.subr.bf16.mxu1 %v4198_v61 }
 0x1b6   : > { %v4870_v10 = vpop.f32.mrf.mxu1  ;;  %v4872_v11 = vadd.f32 %v1737_v5, %v1607_v7 }
 0x1b7   : > { %v1612_v13 = vpop.f32.mrf.mxu0 }
 0x1b8   : > { %v1743_v17 = vpop.f32.mrf.mxu1  ;;  %v1613_v18 = vadd.f32 %v1612_v13, %v4805_v1  ;;  %3689 = vmatpush3.bf16.msra.mxu1 %v4198_v61 }
 0x1b9   : > { %v1614_v19 = vpop.f32.mrf.mxu0 }
 0x1ba   : > { %v1745_v20 = vpop.f32.mrf.mxu1  ;;  %v4875_v21 = vadd.f32 %v1743_v17, %v1613_v18  ;;  %v1615_v23 = vadd.f32 %v1614_v19, %v4807_v2  ;;  %v4199_v18 = vld [vmem:[#allocation8 + $0x28] sm:$0xff]  }
 0x1bb   : > { %v1616_v24 = vpop.f32.mrf.mxu0  ;;  %3690 = vmatprep.subr.bf16.mxu1 %v4199_v18 }
 0x1bc   : > { %v1747_v25 = vpop.f32.mrf.mxu1  ;;  %v4878_v27 = vadd.f32 %v1745_v20, %v1615_v23  ;;  %v1617_v31 = vadd.f32 %v1616_v24, %v4805_v1  ;;  %3691 = vmatpush3.bf16.msra.mxu1 %v4199_v18 }
 0x1bd   : > { %v1618_v32 = vpop.f32.mrf.mxu0 }
 0x1be   : > { %v1749_v33 = vpop.f32.mrf.mxu1  ;;  %v4881_v34 = vadd.f32 %v1747_v25, %v1617_v31  ;;  %v1619_v35 = vadd.f32 %v1618_v32, %v4807_v2 }
 0x1bf   : > { %v1622_v37 = vpop.f32.mrf.mxu0 }
 0x1c0   : > { %v1753_v38 = vpop.f32.mrf.mxu1  ;;  %v4884_v39 = vadd.f32 %v1749_v33, %v1619_v35  ;;  %v1623_v41 = vadd.f32 %v1622_v37, %v4805_v1 }
 0x1c1   : > { %v1624_v45 = vpop.f32.mrf.mxu0 }
 0x1c2   : > { %v1755_v46 = vpop.f32.mrf.mxu1  ;;  %v4887_v47 = vadd.f32 %v1753_v38, %v1623_v41  ;;  %v1625_v48 = vadd.f32 %v1624_v45, %v4807_v2 }
 0x1c3   : > { %v1626_v49 = vpop.f32.mrf.mxu0 }
 0x1c4   : > { %v1757_v51 = vpop.f32.mrf.mxu1  ;;  %v4890_v52 = vadd.f32 %v1755_v46, %v1625_v48  ;;  %v1627_v53 = vadd.f32 %v1626_v49, %v4805_v1 }
 0x1c5   : > { %v1628_v55 = vpop.f32.mrf.mxu0 }
 0x1c6   : > { %v1759_v59 = vpop.f32.mrf.mxu1  ;;  %v4893_v62 = vadd.f32 %v1757_v51, %v1627_v53  ;;  %v1629_v63 = vadd.f32 %v1628_v55, %v4807_v2 }
 0x1c7   : > { %v1632_v3 = vpop.f32.mrf.mxu0 }
 0x1c8   : > { %v1763_v4 = vpop.f32.mrf.mxu1  ;;  %v4896_v5 = vadd.f32 %v1759_v59, %v1629_v63  ;;  %v1633_v7 = vadd.f32 %v1632_v3, %v4805_v1 }
 0x1c9   : > { %v1634_v13 = vpop.f32.mrf.mxu0 }
 0x1ca   : > { %v1765_v17 = vpop.f32.mrf.mxu1  ;;  %v4899_v19 = vadd.f32 %v1763_v4, %v1633_v7  ;;  %v1635_v20 = vadd.f32 %v1634_v13, %v4807_v2 }
 0x1cb   : > { %v1636_v23 = vpop.f32.mrf.mxu0 }
 0x1cc   : > { %v1767_v24 = vpop.f32.mrf.mxu1  ;;  %v4902_v25 = vadd.f32 %v1765_v17, %v1635_v20  ;;  %v1637_v31 = vadd.f32 %v1636_v23, %v4805_v1 }
 0x1cd   : > { %v1638_v32 = vpop.f32.mrf.mxu0 }
 0x1ce   : > { %v1769_v33 = vpop.f32.mrf.mxu1  ;;  %v4905_v35 = vadd.f32 %v1767_v24, %v1637_v31  ;;  %v1639_v37 = vadd.f32 %v1638_v32, %v4807_v2 }
 0x1cf   : > { %v1642_v38 = vpop.f32.mrf.mxu0 }
 0x1d0   : > { %v1773_v41 = vpop.f32.mrf.mxu1  ;;  %v4908_v45 = vadd.f32 %v1769_v33, %v1639_v37  ;;  %v1643_v46 = vadd.f32 %v1642_v38, %v4805_v1 }
 0x1d1   : > { %v1644_v48 = vpop.f32.mrf.mxu0 }
 0x1d2   : > { %5156 = vst [vmem:[#allocation19_spill] sm:$0xff] %v4908_v45  ;;  %v1775_v49 = vpop.f32.mrf.mxu1  ;;  %v1774_v51 = vadd.f32 %v1773_v41, %v1643_v46  ;;  %v1645_v53 = vadd.f32 %v1644_v48, %v4807_v2 }
 0x1d3   : > { %v1646_v55 = vpop.f32.mrf.mxu0 }
 0x1d4   : > { %v1777_v59 = vpop.f32.mrf.mxu1  ;;  %v1776_v60 = vadd.f32 %v1775_v49, %v1645_v53  ;;  %v1647_v61 = vadd.f32 %v1646_v55, %v4805_v1 }
 0x1d5   : > { %v1648_v63 = vpop.f32.mrf.mxu0 }
 0x1d6   : > { %v1779_v3 = vpop.f32.mrf.mxu1  ;;  %v1778_v4 = vadd.f32 %v1777_v59, %v1647_v61  ;;  %v1649_v7 = vadd.f32 %v1648_v63, %v4807_v2 }
 0x1d7   : > { %v1652_v13 = vpop.f32.mrf.mxu0 }
 0x1d8   : > { %v1783_v17 = vpop.f32.mrf.mxu1  ;;  %v1780_v20 = vadd.f32 %v1779_v3, %v1649_v7  ;;  %v1653_v18 = vadd.f32 %v1652_v13, %v4805_v1 }
 0x1d9   : > { %v1654_v23 = vpop.f32.mrf.mxu0 }
 0x1da   : > { %v1785_v24 = vpop.f32.mrf.mxu1  ;;  %v1784_v31 = vadd.f32 %v1783_v17, %v1653_v18  ;;  %v1655_v32 = vadd.f32 %v1654_v23, %v4807_v2 }
 0x1db   : > { %v1656_v33 = vpop.f32.mrf.mxu0 }
 0x1dc   : > { %v1787_v37 = vpop.f32.mrf.mxu1  ;;  %v1786_v38 = vadd.f32 %v1785_v24, %v1655_v32 }
 0x1dd   : > { %v1657_v41 = vpop.f32.mrf.mxu0 }
 0x1de   : > { %v1788_v46 = vpop.f32.mrf.mxu1 }
 0x1df   : > { %v1824_v48 = vpop.f32.mrf.mxu0 }
 0x1e0   : > { %v1904_v49 = vpop.f32.mrf.mxu1 }
 0x1e1   : > { %v4916_v53 = vadd.f32 %v1904_v49, %v1774_v51  ;;  %v1826_v55 = vpop.f32.mrf.mxu0 }
 0x1e2   : > { %v1906_v59 = vpop.f32.mrf.mxu1 }
 0x1e3   : > { %5157 = vst [vmem:[#allocation20_spill] sm:$0xff] %v4916_v53  ;;  %v4918_v61 = vadd.f32 %v1906_v59, %v1776_v60  ;;  %v1828_v63 = vpop.f32.mrf.mxu0 }
 0x1e4   : > { %v1908_v1 = vpop.f32.mrf.mxu1 }
 0x1e5   : > { %5158 = vst [vmem:[#allocation21_spill] sm:$0xff] %v4918_v61  ;;  %v4920_v3 = vadd.f32 %v1908_v1, %v1778_v4  ;;  %v1830_v7 = vpop.f32.mrf.mxu0  ;;  %v1569_v4 = vadd.f32 %v4816_v14, %v4807_v2  ;;  %v1579_v14 = vadd.f32 %v4829_v28, %v4807_v2 }
 0x1e6   : > { %v1910_v13 = vpop.f32.mrf.mxu1 }
 0x1e7   : > { %5159 = vst [vmem:[#allocation22_spill] sm:$0xff] %v4920_v3  ;;  %v4922_v17 = vadd.f32 %v1910_v13, %v1780_v20  ;;  %v1834_v18 = vpop.f32.mrf.mxu0  ;;  %v1825_v20 = vadd.f32 %v1824_v48, %v4810_v8 }
 0x1e8   : > { %v1914_v23 = vpop.f32.mrf.mxu1 }
 0x1e9   : > { %5160 = vst [vmem:[#allocation23_spill] sm:$0xff] %v4922_v17  ;;  %v4924_v24 = vadd.f32 %v1914_v23, %v1784_v31  ;;  %v1836_v32 = vpop.f32.mrf.mxu0  ;;  %v1700_v31 = vadd.f32 %v4818_v15, %v1569_v4  ;;  %v1827_v23 = vadd.f32 %v1826_v55, %v4813_v12  ;;  %v1835_v12 = vadd.f32 %v1834_v18, %v4823_v22 }
 0x1ea   : > { %v1916_v33 = vpop.f32.mrf.mxu1  ;;  %v1710_v4 = vadd.f32 %v4831_v29, %v1579_v14  ;;  %v1589_v22 = vadd.f32 %v4842_v42, %v4807_v2 }
 0x1eb   : > { %5161 = vst [vmem:[#allocation24_spill] sm:$0xff] %v4924_v24  ;;  %v4926_v51 = vadd.f32 %v1916_v33, %v1786_v38  ;;  %v1838_v37 = vpop.f32.mrf.mxu0  ;;  %v1829_v38 = vadd.f32 %v1828_v63, %v4820_v16 }
 0x1ec   : > { %v1918_v41 = vpop.f32.mrf.mxu1  ;;  %v1839_v28 = vadd.f32 %v1838_v37, %v4833_v30 }
 0x1ed   : > { %5162 = vst [vmem:[#allocation25_spill] sm:$0xff] %v4926_v51  ;;  %v1840_v60 = vpop.f32.mrf.mxu0  ;;  %v1831_v51 = vadd.f32 %v1830_v7, %v1700_v31 }
 0x1ee   : > { %v1919_v46 = vpop.f32.mrf.mxu1 }
 0x1ef   : > { %v1844_v49 = vpop.f32.mrf.mxu0 }
 0x1f0   : > { %v1955_v59 = vpop.f32.mrf.mxu1  ;;  %v1845_v30 = vadd.f32 %v1844_v49, %v4836_v36  ;;  %v1599_v36 = vadd.f32 %v4855_v56, %v4807_v2 }
 0x1f1   : > { %v1846_v1 = vpop.f32.mrf.mxu0  ;;  %v1956_v33 = vadd.f32 %v1955_v59, %v1825_v20  ;;  %v1837_v20 = vadd.f32 %v1836_v32, %v4826_v26 }
 0x1f2   : > { %v1957_v13 = vpop.f32.mrf.mxu1 }
 0x1f3   : > { %v1848_v24 = vpop.f32.mrf.mxu0  ;;  %v1958_v46 = vadd.f32 %v1957_v13, %v1827_v23  ;;  %v2052_v8 = vmax.f32 %v1956_v33, 0.0 }
 0x1f4   : > { %v1959_v41 = vpop.f32.mrf.mxu1  ;;  %v1849_v42 = vadd.f32 %v1848_v24, %v4846_v44 }
 0x1f5   : > { %v1960_v17 = vadd.f32 %v1959_v41, %v1829_v38  ;;  %v1850_v3 = vpop.f32.mrf.mxu0  ;;  %v2053_v55 = vmax.f32 %v1958_v46, 0.0 }
 0x1f6   : > { %v1961_v61 = vpop.f32.mrf.mxu1 }
 0x1f7   : > { %v2054_v48 = vmax.f32 %v1960_v17, 0.0  ;;  %v1962_v53 = vadd.f32 %v1961_v61, %v1831_v51  ;;  %v1854_v45 = vpop.f32.mrf.mxu0  ;;  %v1841_v61 = vadd.f32 %v1840_v60, %v1710_v4  ;;  %v1720_v60 = vadd.f32 %v4844_v43, %v1589_v22 }
 0x1f8   : > { %v1965_v15 = vpop.f32.mrf.mxu1  ;;  %v1855_v44 = vadd.f32 %v1854_v45, %v4849_v50  ;;  %v1609_v50 = vadd.f32 %v4868_v9, %v4807_v2 }
 0x1f9   : > { %v2090_v16 = vpack.c.bf16 %v2054_v48, %v2052_v8  ;;  %v2055_v63 = vmax.f32 %v1962_v53, 0.0  ;;  %v1856_v7 = vpop.f32.mrf.mxu0  ;;  %v1966_v31 = vadd.f32 %v1965_v15, %v1835_v12  ;;  %v1847_v15 = vadd.f32 %v1846_v1, %v4839_v40 }
 0x1fa   : > { %v1967_v59 = vpop.f32.mrf.mxu1  ;;  %v1851_v4 = vadd.f32 %v1850_v3, %v1720_v60  ;;  %v1730_v3 = vadd.f32 %v4857_v57, %v1599_v36  ;;  %v1857_v22 = vadd.f32 %v1856_v7, %v4852_v54 }
 0x1fb   : > { %v2091_v13 = vpack.c.bf16 %v2055_v63, %v2053_v55  ;;  %v1858_v23 = vpop.f32.mrf.mxu0  ;;  %v1968_v51 = vadd.f32 %v1967_v59, %v1837_v20  ;;  %v2056_v29 = vmax.f32 %v1966_v31, 0.0 }
 0x1fc   : > { %v1969_v17 = vpop.f32.mrf.mxu1  ;;  %v1859_v56 = vadd.f32 %v1858_v23, %v4859_v58 }
 0x1fd   : > { %v1970_v38 = vadd.f32 %v1969_v17, %v1839_v28  ;;  %2277 = vmatprep.mubr.bf16.mxu0 %v2091_v13  ;;  %v1860_v53 = vpop.f32.mrf.mxu0  ;;  %v2057_v37 = vmax.f32 %v1968_v51, 0.0 }
 0x1fe   : > { %v1971_v18 = vpop.f32.mrf.mxu1  ;;  %2278 = vmatmul.mubr.bf16.vlgmr.msra.gmra.mxu0 %v2090_v16 }
 0x1ff   : > { %v2058_v33 = vmax.f32 %v1970_v38, 0.0  ;;  %v1972_v41 = vadd.f32 %v1971_v18, %v1841_v61  ;;  %v1864_v26 = vpop.f32.mrf.mxu0 }
 0x200   : > { %v1975_v32 = vpop.f32.mrf.mxu1  ;;  %v1865_v58 = vadd.f32 %v1864_v26, %v4862_v0 }
 0x201   : > { %v2092_v46 = vpack.c.bf16 %v2058_v33, %v2056_v29  ;;  %v2059_v14 = vmax.f32 %v1972_v41, 0.0  ;;  %v1866_v8 = vpop.f32.mrf.mxu0  ;;  %v1976_v55 = vadd.f32 %v1975_v32, %v1845_v30  ;;  %v1861_v32 = vadd.f32 %v1860_v53, %v1730_v3 }
 0x202   : > { %v1977_v48 = vpop.f32.mrf.mxu1  ;;  %v1740_v53 = vadd.f32 %v4870_v10, %v1609_v50 }
 0x203   : > { %v2093_v12 = vpack.c.bf16 %v2059_v14, %v2057_v37  ;;  %v1868_v16 = vpop.f32.mrf.mxu0  ;;  %v1978_v59 = vadd.f32 %v1977_v48, %v1847_v15  ;;  %v2060_v43 = vmax.f32 %v1976_v55, 0.0  ;;  %v1867_v55 = vadd.f32 %v1866_v8, %v4865_v6 }
 0x204   : > { %v1979_v63 = vpop.f32.mrf.mxu1  ;;  %v1869_v2 = vadd.f32 %v1868_v16, %v4872_v11 }
 0x205   : > { %v1980_v20 = vadd.f32 %v1979_v63, %v1849_v42  ;;  %2285 = vmatprep.mubr.bf16.mxu0 %v2093_v12  ;;  %v1870_v49 = vpop.f32.mrf.mxu0  ;;  %v2061_v24 = vmax.f32 %v1978_v59, 0.0 }
 0x206   : > { %v1981_v28 = vpop.f32.mrf.mxu1  ;;  %2286 = vmatmul.mubr.bf16.gmra.mxu0 %v2092_v46  ;;  %v1871_v59 = vadd.f32 %v1870_v49, %v1740_v53 }
 0x207   : > { %v2062_v13 = vmax.f32 %v1980_v20, 0.0  ;;  %v1982_v31 = vadd.f32 %v1981_v28, %v1851_v4  ;;  %v1874_v40 = vpop.f32.mrf.mxu0 }
 0x208   : > { %v1985_v1 = vpop.f32.mrf.mxu1 }
 0x209   : > { %v2094_v17 = vpack.c.bf16 %v2062_v13, %v2060_v43  ;;  %v2063_v61 = vmax.f32 %v1982_v31, 0.0  ;;  %v1876_v51 = vpop.f32.mrf.mxu0  ;;  %v1986_v29 = vadd.f32 %v1985_v1, %v1855_v44  ;;  %v1875_v31 = vadd.f32 %v1874_v40, %v4875_v21 }
 0x20a   : > { %v1987_v38 = vpop.f32.mrf.mxu1  ;;  %v1877_v44 = vadd.f32 %v1876_v51, %v4878_v27 }
 0x20b   : > { %v2095_v18 = vpack.c.bf16 %v2063_v61, %v2061_v24  ;;  %v1878_v33 = vpop.f32.mrf.mxu0  ;;  %v1988_v30 = vadd.f32 %v1987_v38, %v1857_v22  ;;  %v2064_v57 = vmax.f32 %v1986_v29, 0.0 }
 0x20c   : > { %v1989_v41 = vpop.f32.mrf.mxu1  ;;  %v1879_v49 = vadd.f32 %v1878_v33, %v4881_v34 }
 0x20d   : > { %v1990_v37 = vadd.f32 %v1989_v41, %v1859_v56  ;;  %2293 = vmatprep.mubr.bf16.mxu0 %v2095_v18  ;;  %v1880_v45 = vpop.f32.mrf.mxu0  ;;  %v2065_v23 = vmax.f32 %v1988_v30, 0.0 }
 0x20e   : > { %v1991_v46 = vpop.f32.mrf.mxu1  ;;  %2294 = vmatmul.mubr.bf16.gmra.mxu0 %v2094_v17  ;;  %v1881_v3 = vadd.f32 %v1880_v45, %v4884_v39 }
 0x20f   : > { %v2066_v14 = vmax.f32 %v1990_v37, 0.0  ;;  %v1992_v60 = vadd.f32 %v1991_v46, %v1861_v32  ;;  %v1884_v54 = vpop.f32.mrf.mxu0 }
 0x210   : > { %v1995_v7 = vpop.f32.mrf.mxu1  ;;  %v1885_v32 = vadd.f32 %v1884_v54, %v4887_v47 }
 0x211   : > { %v2096_v48 = vpack.c.bf16 %v2066_v14, %v2064_v57  ;;  %v2067_v15 = vmax.f32 %v1992_v60, 0.0  ;;  %v1886_v42 = vpop.f32.mrf.mxu0  ;;  %v1996_v63 = vadd.f32 %v1995_v7, %v1865_v58 }
 0x212   : > { %v1997_v12 = vpop.f32.mrf.mxu1  ;;  %v1887_v37 = vadd.f32 %v1886_v42, %v4890_v52 }
 0x213   : > { %v2097_v9 = vpack.c.bf16 %v2067_v15, %v2065_v23  ;;  %v1998_v20 = vadd.f32 %v1997_v12, %v1867_v55  ;;  %v1888_v28 = vpop.f32.mrf.mxu0  ;;  %v2068_v26 = vmax.f32 %v1996_v63, 0.0 }
 0x214   : > { %v1999_v4 = vpop.f32.mrf.mxu1  ;;  %v1889_v39 = vadd.f32 %v1888_v28, %v4893_v62 }
 0x215   : > { %v2000_v36 = vadd.f32 %v1999_v4, %v1869_v2  ;;  %2301 = vmatprep.mubr.bf16.mxu0 %v2097_v9  ;;  %v2069_v1 = vmax.f32 %v1998_v20, 0.0  ;;  %v1890_v11 = vpop.f32.mrf.mxu0  ;;  %v5163_v4 = vld [vmem:[#allocation19_spill] sm:$0xff] }
 0x216   : > { %v2001_v0 = vpop.f32.mrf.mxu1  ;;  %2302 = vmatmul.mubr.bf16.gmra.mxu0 %v2096_v48  ;;  %v1891_v57 = vadd.f32 %v1890_v11, %v4896_v5  ;;  %v5165_v11 = vld [vmem:[#allocation21_spill] sm:$0xff] }
 0x217   : > { %v2070_v43 = vmax.f32 %v2000_v36, 0.0  ;;  %v2002_v13 = vadd.f32 %v2001_v0, %v1871_v59  ;;  %v1894_v56 = vpop.f32.mrf.mxu0 }
 0x218   : > { %v2005_v10 = vpop.f32.mrf.mxu1  ;;  %v1895_v15 = vadd.f32 %v1894_v56, %v4899_v19 }
 0x219   : > { %v2098_v6 = vpack.c.bf16 %v2070_v43, %v2068_v26  ;;  %v2071_v8 = vmax.f32 %v2002_v13, 0.0  ;;  %v2006_v17 = vadd.f32 %v2005_v10, %v1875_v31  ;;  %v1896_v33 = vpop.f32.mrf.mxu0 }
 0x21a   : > { %v2007_v16 = vpop.f32.mrf.mxu1  ;;  %v1897_v55 = vadd.f32 %v1896_v33, %v4902_v25 }
 0x21b   : > { %v2099_v24 = vpack.c.bf16 %v2071_v8, %v2069_v1  ;;  %v2008_v38 = vadd.f32 %v2007_v16, %v1877_v44  ;;  %v2072_v21 = vmax.f32 %v2006_v17, 0.0  ;;  %v1898_v7 = vpop.f32.mrf.mxu0  ;;  %v5166_v44 = vld [vmem:[#allocation22_spill] sm:$0xff] }
 0x21c   : > { %v2009_v61 = vpop.f32.mrf.mxu1  ;;  %v1899_v5 = vadd.f32 %v1898_v7, %v4905_v35  ;;  %v5164_v35 = vld [vmem:[#allocation20_spill] sm:$0xff]  ;;  %v4205_v7 = vld [vmem:[#allocation10 + $0x38] sm:$0xff]  }
 0x21d   : > { %v2010_v22 = vadd.f32 %v2009_v61, %v1879_v49  ;;  %2309 = vmatprep.mubr.bf16.mxu0 %v2099_v24  ;;  %v2073_v27 = vmax.f32 %v2008_v38, 0.0  ;;  %v1900_v42 = vpop.f32.mrf.mxu0 }
 0x21e   : > { %v2011_v18 = vpop.f32.mrf.mxu1  ;;  %2310 = vmatmul.mubr.bf16.gmra.mxu0 %v2098_v6  ;;  %v1901_v59 = vadd.f32 %v1900_v42, %v5163_v4 }
 0x21f   : > { %v2074_v40 = vmax.f32 %v2010_v22, 0.0  ;;  %v2012_v29 = vadd.f32 %v2011_v18, %v1881_v3  ;;  %v5167_v3 = vld [vmem:[#allocation23_spill] sm:$0xff] }
 0x220   : > { %v2015_v41 = vpop.f32.mrf.mxu1 }
 0x221   : > { %v2100_v51 = vpack.c.bf16 %v2074_v40, %v2072_v21  ;;  %v2075_v34 = vmax.f32 %v2012_v29, 0.0  ;;  %v2016_v45 = vadd.f32 %v2015_v41, %v1885_v32  ;;  %v5168_v41 = vld [vmem:[#allocation25_spill] sm:$0xff] }
 0x222   : > { %v2017_v30 = vpop.f32.mrf.mxu1 }
 0x223   : > { %v2101_v50 = vpack.c.bf16 %v2075_v34, %v2073_v27  ;;  %v2018_v14 = vadd.f32 %v2017_v30, %v1887_v37  ;;  %v2076_v47 = vmax.f32 %v2016_v45, 0.0  ;;  %v5169_v27 = vld [vmem:[#allocation24_spill] sm:$0xff]  ;;  %v4201_v45 = vld [vmem:[#allocation8 + $0x18] sm:$0xff]  }
 0x224   : > { %v2019_v46 = vpop.f32.mrf.mxu1  ;;  %v4200_v37 = vld [vmem:[#allocation8 + $0x20] sm:$0xff]  }
 0x225   : > { %v2020_v60 = vadd.f32 %v2019_v46, %v1889_v39  ;;  %2317 = vmatprep.mubr.bf16.mxu0 %v2101_v50  ;;  %v2077_v52 = vmax.f32 %v2018_v14, 0.0  ;;  %3692 = vmatprep.subr.bf16.mxu1 %v4200_v37  ;;  %v4203_v14 = vld [vmem:[#allocation8 + $0x8] sm:$0xff]  }
 0x226   : > { %v2021_v58 = vpop.f32.mrf.mxu1  ;;  %2318 = vmatmul.mubr.bf16.gmra.mxu0 %v2100_v51  ;;  %3693 = vmatpush3.bf16.msra.mxu1 %v4200_v37 }
 0x227   : > { %v2078_v54 = vmax.f32 %v2020_v60, 0.0  ;;  %v2022_v23 = vadd.f32 %v2021_v58, %v1891_v57  ;;  %3694 = vmatprep.subr.bf16.mxu1 %v4201_v45  ;;  %v4202_v57 = vld [vmem:[#allocation8 + $0x10] sm:$0xff]   ;;  %v4204_v60 = vld [vmem:[#allocation8] sm:$0xff]  }
 0x228   : > { %v2025_v48 = vpop.f32.mrf.mxu1 }
 0x229   : > { %v2102_v53 = vpack.c.bf16 %v2078_v54, %v2076_v47  ;;  %v2079_v62 = vmax.f32 %v2022_v23, 0.0  ;;  %v2026_v9 = vadd.f32 %v2025_v48, %v1895_v15  ;;  %v4979_v23 = vld [vmem:[%s5118_s4] ss:$0 sm:$0xff] }
 0x22a   : > { %v2027_v12 = vpop.f32.mrf.mxu1  ;;  %3695 = vmatpush3.bf16.msra.mxu1 %v4201_v45 }
 0x22b   : > { %v2103_v2 = vpack.c.bf16 %v2079_v62, %v2077_v52  ;;  %v2028_v20 = vadd.f32 %v2027_v12, %v1897_v55  ;;  %v2080_v19 = vmax.f32 %v2026_v9, 0.0  ;;  %3696 = vmatprep.subr.bf16.mxu1 %v4202_v57 }
 0x22c   : > { %v2029_v63 = vpop.f32.mrf.mxu1 }
 0x22d   : > { %v2030_v36 = vadd.f32 %v2029_v63, %v1899_v5  ;;  %2325 = vmatprep.mubr.bf16.mxu0 %v2103_v2  ;;  %v2081_v13 = vmax.f32 %v2028_v20, 0.0 }
 0x22e   : > { %v2031_v28 = vpop.f32.mrf.mxu1  ;;  %2326 = vmatmul.mubr.bf16.gmra.mxu0 %v2102_v53  ;;  %3697 = vmatpush3.bf16.msra.mxu1 %v4202_v57 }
 0x22f   : > { %v2082_v0 = vmax.f32 %v2030_v36, 0.0  ;;  %v2032_v26 = vadd.f32 %v2031_v28, %v1901_v59  ;;  %3698 = vmatprep.subr.bf16.mxu1 %v4203_v14 }
 0x230   : > { %v2035_v43 = vpop.f32.mrf.mxu1 }
 0x231   : > { %v2104_v10 = vpack.c.bf16 %v2082_v0, %v2080_v19  ;;  %v2083_v31 = vmax.f32 %v2032_v26, 0.0  ;;  %v2036_v6 = vadd.f32 %v2035_v43, %v5164_v35 }
 0x232   : > { %v2037_v25 = vpop.f32.mrf.mxu1  ;;  %3699 = vmatpush3.bf16.msra.mxu1 %v4203_v14 }
 0x233   : > { %v2105_v1 = vpack.c.bf16 %v2083_v31, %v2081_v13  ;;  %v2038_v16 = vadd.f32 %v2037_v25, %v5165_v11  ;;  %v2084_v17 = vmax.f32 %v2036_v6, 0.0  ;;  %3700 = vmatprep.subr.bf16.mxu1 %v4204_v60  ;;  %v4206_v31 = vld [vmem:[#allocation10 + $0x30] sm:$0xff]   ;;  %v4207_v11 = vld [vmem:[#allocation10 + $0x28] sm:$0xff]  }
 0x234   : > { %v2039_v8 = vpop.f32.mrf.mxu1 }
 0x235   : > { %v2040_v49 = vadd.f32 %v2039_v8, %v5166_v44  ;;  %2333 = vmatprep.mubr.bf16.mxu0 %v2105_v1  ;;  %v2085_v56 = vmax.f32 %v2038_v16, 0.0 }
 0x236   : > { %v2041_v24 = vpop.f32.mrf.mxu1  ;;  %2334 = vmatmul.mubr.bf16.gmra.mxu0 %v2104_v10  ;;  %3701 = vmatpush3.bf16.msra.mxu1 %v4204_v60 }
 0x237   : > { %v2086_v61 = vmax.f32 %v2040_v49, 0.0  ;;  %v2042_v38 = vadd.f32 %v2041_v24, %v5167_v3  ;;  %3722 = vmatprep.subr.bf16.mxu1 %v4205_v7  ;;  %v4208_v3 = vld [vmem:[#allocation10 + $0x20] sm:$0xff]  }
 0x238   : > { %v2045_v22 = vpop.f32.mrf.mxu1 }
 0x239   : > { %v2106_v18 = vpack.c.bf16 %v2086_v61, %v2084_v17  ;;  %v2087_v21 = vmax.f32 %v2042_v38, 0.0  ;;  %v2046_v51 = vadd.f32 %v2045_v22, %v5169_v27 }
 0x23a   : > { %v2047_v40 = vpop.f32.mrf.mxu1 }
 0x23b   : > { %v2107_v29 = vpack.c.bf16 %v2087_v21, %v2085_v56  ;;  %v2048_v32 = vadd.f32 %v2047_v40, %v5168_v41  ;;  %v2088_v50 = vmax.f32 %v2046_v51, 0.0  ;;  %v4209_v40 = vld [vmem:[#allocation10 + $0x18] sm:$0xff]  }
 0x23c   : > { %v2049_v34 = vpop.f32.mrf.mxu1 }
 0x23d   : > { %v2089_v33 = vmax.f32 %v2048_v32, 0.0  ;;  %2341 = vmatprep.mubr.bf16.mxu0 %v2107_v29  ;;  %v2108_v46 = vpack.c.bf16 %v2088_v50, %v2088_v50 }
 0x23e   : > { %v2050_v30 = vpop.f32.mrf.mxu1  ;;  %2342 = vmatmul.mubr.bf16.gmra.mxu0 %v2106_v18 }
 0x23f   : > { %v2109_v39 = vpack.c.bf16 %v2089_v33, %v2089_v33 }
 0x241   : > { %2349 = vmatprep.mubr.bf16.mxu0 %v2109_v39 }
 0x246   : > { %2350 = vmatmul.mubr.bf16.gmra.mxu0 %v2108_v46 }
 0x2be   : > { %v3572_v58 = vpop.f32.mrf.mxu0 }
 0x2c0   : > { %v3573_v47 = vpop.f32.mrf.mxu0 }
 0x2c1   : > { %v3574_v54 = vadd.f32 %v3573_v47, %v3572_v58 }
 0x2c2   : > { %v3575_v48 = vpop.f32.mrf.mxu0 }
 0x2c3   : > { %v2280_v52 = vadd.f32 %v3574_v54, %v4979_v23 }
 0x2c4   : > { %v3576_v15 = vpop.f32.mrf.mxu0 }
 0x2c5   : > { %v3577_v53 = vadd.f32 %v3576_v15, %v3575_v48  ;;  %v2357_v55 = vmax.f32 %v2280_v52, 0.0 }
 0x2c6   : > { %v3578_v62 = vpop.f32.mrf.mxu0 }
 0x2c7   : > { %v2283_v42 = vadd.f32 %v3577_v53, %v4979_v23 }
 0x2c8   : > { %v3579_v12 = vpop.f32.mrf.mxu0 }
 0x2c9   : > { %v2358_v5 = vmax.f32 %v2283_v42, 0.0  ;;  %v3580_v2 = vadd.f32 %v3579_v12, %v3578_v62 }
 0x2ca   : > { %v3581_v9 = vpop.f32.mrf.mxu0 }
 0x2cb   : > { %v2376_v63 = vpack.c.bf16 %v2358_v5, %v2357_v55  ;;  %v2288_v59 = vadd.f32 %v3580_v2, %v4979_v23 }
 0x2cc   : > { %v3582_v4 = vpop.f32.mrf.mxu0 }
 0x2cd   : > { %v3583_v20 = vadd.f32 %v3582_v4, %v3581_v9  ;;  %3702 = vmatprep.mubr.bf16.mxu1 %v2376_v63  ;;  %v2359_v0 = vmax.f32 %v2288_v59, 0.0 }
 0x2ce   : > { %v3584_v36 = vpop.f32.mrf.mxu0 }
 0x2cf   : > { %v2291_v28 = vadd.f32 %v3583_v20, %v4979_v23 }
 0x2d0   : > { %v3585_v19 = vpop.f32.mrf.mxu0 }
 0x2d1   : > { %v2360_v26 = vmax.f32 %v2291_v28, 0.0  ;;  %v3586_v43 = vadd.f32 %v3585_v19, %v3584_v36 }
 0x2d2   : > { %v3587_v13 = vpop.f32.mrf.mxu0 }
 0x2d3   : > { %v2377_v10 = vpack.c.bf16 %v2360_v26, %v2359_v0  ;;  %v2296_v1 = vadd.f32 %v3586_v43, %v4979_v23 }
 0x2d4   : > { %v3588_v25 = vpop.f32.mrf.mxu0 }
 0x2d5   : > { %v3589_v35 = vadd.f32 %v3588_v25, %v3587_v13  ;;  %3703 = vmatmul.mubr.bf16.vlgmr.msra.gmra.mxu1 %v2377_v10  ;;  %v2361_v44 = vmax.f32 %v2296_v1, 0.0 }
 0x2d6   : > { %v3590_v6 = vpop.f32.mrf.mxu0  ;;  %3723 = vmatpush3.bf16.msra.mxu1 %v4205_v7 }
 0x2d7   : > { %v2299_v8 = vadd.f32 %v3589_v35, %v4979_v23  ;;  %3724 = vmatprep.subr.bf16.mxu1 %v4206_v31 }
 0x2d8   : > { %v3591_v16 = vpop.f32.mrf.mxu0 }
 0x2d9   : > { %v2362_v49 = vmax.f32 %v2299_v8, 0.0  ;;  %v3592_v24 = vadd.f32 %v3591_v16, %v3590_v6 }
 0x2da   : > { %v3593_v17 = vpop.f32.mrf.mxu0  ;;  %3725 = vmatpush3.bf16.msra.mxu1 %v4206_v31 }
 0x2db   : > { %v2378_v61 = vpack.c.bf16 %v2362_v49, %v2361_v44  ;;  %3726 = vmatprep.subr.bf16.mxu1 %v4207_v11  ;;  %v2304_v22 = vadd.f32 %v3592_v24, %v4979_v23 }
 0x2dc   : > { %v3594_v38 = vpop.f32.mrf.mxu0 }
 0x2dd   : > { %v3595_v56 = vadd.f32 %v3594_v38, %v3593_v17  ;;  %3706 = vmatprep.mubr.bf16.mxu1 %v2378_v61  ;;  %v2363_v41 = vmax.f32 %v2304_v22, 0.0 }
 0x2de   : > { %v3596_v18 = vpop.f32.mrf.mxu0  ;;  %3727 = vmatpush3.bf16.msra.mxu1 %v4207_v11 }
 0x2df   : > { %v2307_v21 = vadd.f32 %v3595_v56, %v4979_v23  ;;  %3728 = vmatprep.subr.bf16.mxu1 %v4208_v3 }
 0x2e0   : > { %v3597_v29 = vpop.f32.mrf.mxu0 }
 0x2e1   : > { %v2364_v32 = vmax.f32 %v2307_v21, 0.0  ;;  %v3598_v27 = vadd.f32 %v3597_v29, %v3596_v18 }
 0x2e2   : > { %v3599_v51 = vpop.f32.mrf.mxu0  ;;  %3729 = vmatpush3.bf16.msra.mxu1 %v4208_v3 }
 0x2e3   : > { %v2379_v34 = vpack.c.bf16 %v2364_v32, %v2363_v41  ;;  %3730 = vmatprep.subr.bf16.mxu1 %v4209_v40  ;;  %v2312_v30 = vadd.f32 %v3598_v27, %v4979_v23  ;;  %v4210_v32 = vld [vmem:[#allocation10 + $0x10] sm:$0xff]   ;;  %v4211_v27 = vld [vmem:[#allocation10 + $0x8] sm:$0xff]  }
 0x2e4   : > { %v3600_v33 = vpop.f32.mrf.mxu0 }
 0x2e5   : > { %v3601_v37 = vadd.f32 %v3600_v33, %v3599_v51  ;;  %3707 = vmatmul.mubr.bf16.gmra.mxu1 %v2379_v34  ;;  %v2365_v46 = vmax.f32 %v2312_v30, 0.0  ;;  %v4212_v51 = vld [vmem:[#allocation10] sm:$0xff]   ;;  %v4213_v34 = vld [vmem:[#allocation11 + $0x38] sm:$0xff]   ;;  %v4214_v33 = vld [vmem:[#allocation11 + $0x30] sm:$0xff]  }
 0x2e6   : > { %v3602_v39 = vpop.f32.mrf.mxu0  ;;  %3731 = vmatpush3.bf16.msra.mxu1 %v4209_v40  ;;  %3758 = vmatprep.subr.bf16.mxu0 %v4213_v34  ;;  %v4216_v30 = vld [vmem:[#allocation11 + $0x20] sm:$0xff]  }
 0x2e7   : > { %v2315_v50 = vadd.f32 %v3601_v37, %v4979_v23  ;;  %3732 = vmatprep.subr.bf16.mxu1 %v4210_v32  ;;  %3759 = vmatpush3.bf16.msra.mxu0 %v4213_v34  ;;  %v4217_v37 = vld [vmem:[#allocation11 + $0x18] sm:$0xff]  }
 0x2e8   : > { %v3603_v45 = vpop.f32.mrf.mxu0  ;;  %3760 = vmatprep.subr.bf16.mxu0 %v4214_v33 }
 0x2e9   : > { %v2366_v57 = vmax.f32 %v2315_v50, 0.0  ;;  %v3604_v14 = vadd.f32 %v3603_v45, %v3602_v39  ;;  %v5003_v45 = vld [vmem:[%s5120_s6] ss:$0 sm:$0xff] }
 0x2ea   : > { %v3605_v60 = vpop.f32.mrf.mxu0  ;;  %3733 = vmatpush3.bf16.msra.mxu1 %v4210_v32 }
 0x2eb   : > { %v2380_v7 = vpack.c.bf16 %v2366_v57, %v2365_v46  ;;  %v2320_v47 = vadd.f32 %v3604_v14, %v4979_v23  ;;  %3734 = vmatprep.subr.bf16.mxu1 %v4211_v27  ;;  %3761 = vmatpush3.bf16.msra.mxu0 %v4214_v33 }
 0x2ec   : > { %v3606_v58 = vpop.f32.mrf.mxu0 }
 0x2ed   : > { %v3607_v54 = vadd.f32 %v3606_v58, %v3605_v60  ;;  %3710 = vmatprep.mubr.bf16.mxu1 %v2380_v7  ;;  %v2367_v53 = vmax.f32 %v2320_v47, 0.0 }
 0x2ee   : > { %v3608_v48 = vpop.f32.mrf.mxu0  ;;  %3735 = vmatpush3.bf16.msra.mxu1 %v4211_v27 }
 0x2ef   : > { %v2323_v15 = vadd.f32 %v3607_v54, %v4979_v23  ;;  %3736 = vmatprep.subr.bf16.mxu1 %v4212_v51 }
 0x2f0   : > { %v3609_v52 = vpop.f32.mrf.mxu0 }
 0x2f1   : > { %v2368_v62 = vmax.f32 %v2323_v15, 0.0  ;;  %v3610_v42 = vadd.f32 %v3609_v52, %v3608_v48 }
 0x2f2   : > { %v3611_v12 = vpop.f32.mrf.mxu0  ;;  %3737 = vmatpush3.bf16.msra.mxu1 %v4212_v51 }
 0x2f3   : > { %v2381_v55 = vpack.c.bf16 %v2368_v62, %v2367_v53  ;;  %v2328_v2 = vadd.f32 %v3610_v42, %v4979_v23 }
 0x2f4   : > { %v3612_v5 = vpop.f32.mrf.mxu0 }
 0x2f5   : > { %v3613_v9 = vadd.f32 %v3612_v5, %v3611_v12  ;;  %3711 = vmatmul.mubr.bf16.gmra.mxu1 %v2381_v55  ;;  %v2369_v20 = vmax.f32 %v2328_v2, 0.0 }
 0x2f6   : > { %v3614_v63 = vpop.f32.mrf.mxu0 }
 0x2f7   : > { %v2331_v4 = vadd.f32 %v3613_v9, %v4979_v23 }
 0x2f8   : > { %v3615_v59 = vpop.f32.mrf.mxu0 }
 0x2f9   : > { %v2370_v36 = vmax.f32 %v2331_v4, 0.0  ;;  %v3616_v28 = vadd.f32 %v3615_v59, %v3614_v63 }
 0x2fa   : > { %v3617_v19 = vpop.f32.mrf.mxu0 }
 0x2fb   : > { %v2382_v0 = vpack.c.bf16 %v2370_v36, %v2369_v20  ;;  %v2336_v43 = vadd.f32 %v3616_v28, %v4979_v23 }
 0x2fc   : > { %v3618_v26 = vpop.f32.mrf.mxu0 }
 0x2fd   : > { %v3619_v13 = vadd.f32 %v3618_v26, %v3617_v19  ;;  %3714 = vmatprep.mubr.bf16.mxu1 %v2382_v0  ;;  %v2371_v1 = vmax.f32 %v2336_v43, 0.0 }
 0x2fe   : > { %v3620_v10 = vpop.f32.mrf.mxu0 }
 0x2ff   : > { %v2339_v31 = vadd.f32 %v3619_v13, %v4979_v23 }
 0x300   : > { %v3621_v25 = vpop.f32.mrf.mxu0 }
 0x301   : > { %v2372_v35 = vmax.f32 %v2339_v31, 0.0  ;;  %v3622_v6 = vadd.f32 %v3621_v25, %v3620_v10 }
 0x302   : > { %v3623_v8 = vpop.f32.mrf.mxu0 }
 0x303   : > { %v2383_v11 = vpack.c.bf16 %v2372_v35, %v2371_v1  ;;  %v2344_v44 = vadd.f32 %v3622_v6, %v4979_v23 }
 0x304   : > { %v3624_v16 = vpop.f32.mrf.mxu0 }
 0x305   : > { %v3625_v49 = vadd.f32 %v3624_v16, %v3623_v8  ;;  %3715 = vmatmul.mubr.bf16.gmra.mxu1 %v2383_v11  ;;  %v2373_v3 = vmax.f32 %v2344_v44, 0.0 }
 0x306   : > { %v3626_v24 = vpop.f32.mrf.mxu0 }
 0x307   : > { %v2347_v17 = vadd.f32 %v3625_v49, %v4979_v23 }
 0x308   : > { %v3627_v61 = vpop.f32.mrf.mxu0 }
 0x309   : > { %v2374_v38 = vmax.f32 %v2347_v17, 0.0  ;;  %v3628_v22 = vadd.f32 %v3627_v61, %v3626_v24 }
 0x30a   : > { %v3629_v56 = vpop.f32.mrf.mxu0 }
 0x30b   : > { %v2352_v18 = vadd.f32 %v3628_v22, %v4979_v23  ;;  %v2384_v21 = vpack.c.bf16 %v2374_v38, %v2373_v3  ;;  %v4215_v23 = vld [vmem:[#allocation11 + $0x28] sm:$0xff]  }
 0x30c   : > { %v3630_v40 = vpop.f32.mrf.mxu0  ;;  %3762 = vmatprep.subr.bf16.mxu0 %v4215_v23 }
 0x30d   : > { %v2375_v29 = vmax.f32 %v2352_v18, 0.0  ;;  %3718 = vmatprep.mubr.bf16.mxu1 %v2384_v21  ;;  %3763 = vmatpush3.bf16.msra.mxu0 %v4215_v23 }
 0x30e   : > { %3764 = vmatprep.subr.bf16.mxu0 %v4216_v30 }
 0x30f   : > { %v2385_v41 = vpack.c.bf16 %v2375_v29, %v2375_v29 }
 0x311   : > { %3719 = vmatmul.mubr.bf16.gmra.mxu1 %v2385_v41  ;;  %3765 = vmatpush3.bf16.msra.mxu0 %v4216_v30 }
 0x312   : > { %3766 = vmatprep.subr.bf16.mxu0 %v4217_v37 }
 0x315   : > { %3767 = vmatpush3.bf16.msra.mxu0 %v4217_v37 }
 0x395   : > { %v3704_v39 = vpop.f32.mrf.mxu1 }
 0x396   : > { %v2500_v60 = vadd.f32 %v3704_v39, %v5003_v45 }
 0x397   : > { %v2491_v50 = vpop.f32.mrf.mxu1 }
 0x398   : > { %v2492_v57 = vadd.f32 %v5003_v45, %v2491_v50  ;;  %v2571_v15 = vmax.f32 %v2500_v60, 0.0  ;;  %v4218_v60 = vld [vmem:[#allocation11 + $0x10] sm:$0xff]  }
 0x399   : > { %v3705_v46 = vpop.f32.mrf.mxu1  ;;  %3768 = vmatprep.subr.bf16.mxu0 %v4218_v60 }
 0x39a   : > { %v2503_v14 = vadd.f32 %v3705_v46, %v5003_v45  ;;  %v2569_v54 = vmax.f32 %v2492_v57, 0.0  ;;  %3769 = vmatpush3.bf16.msra.mxu0 %v4218_v60 }
 0x39b   : > { %v2494_v7 = vpop.f32.mrf.mxu1 }
 0x39c   : > { %v2495_v58 = vadd.f32 %v5003_v45, %v2494_v7  ;;  %v2572_v47 = vmax.f32 %v2503_v14, 0.0  ;;  %v4219_v7 = vld [vmem:[#allocation11 + $0x8] sm:$0xff]  }
 0x39d   : > { %3770 = vmatprep.subr.bf16.mxu0 %v4219_v7 }
 0x39e   : > { %v2570_v48 = vmax.f32 %v2495_v58, 0.0  ;;  %v2589_v53 = vpack.c.bf16 %v2572_v47, %v2571_v15  ;;  %3771 = vmatpush3.bf16.msra.mxu0 %v4219_v7  ;;  %v4220_v58 = vld [vmem:[#allocation11] sm:$0xff]  }
 0x39f   : > { %3772 = vmatprep.subr.bf16.mxu0 %v4220_v58 }
 0x3a0   : > { %v2588_v52 = vpack.c.bf16 %v2570_v48, %v2569_v54 }
 0x3a2   : > { %3738 = vmatprep.mubr.bf16.mxu1 %v2588_v52  ;;  %3773 = vmatpush3.bf16.msra.mxu0 %v4220_v58 }
 0x3a3   : > { %3739 = vmatmul.mubr.bf16.vlgmr.msra.gmra.mxu1 %v2589_v53 }
 0x3a5   : > { %v3708_v62 = vpop.f32.mrf.mxu1 }
 0x3a6   : > { %v2516_v2 = vadd.f32 %v3708_v62, %v5003_v45 }
 0x3a7   : > { %v2507_v42 = vpop.f32.mrf.mxu1 }
 0x3a8   : > { %v2508_v55 = vadd.f32 %v5003_v45, %v2507_v42  ;;  %v2575_v36 = vmax.f32 %v2516_v2, 0.0 }
 0x3a9   : > { %v3709_v12 = vpop.f32.mrf.mxu1 }
 0x3aa   : > { %v2519_v5 = vadd.f32 %v3709_v12, %v5003_v45  ;;  %v2573_v59 = vmax.f32 %v2508_v55, 0.0 }
 0x3ab   : > { %v2510_v9 = vpop.f32.mrf.mxu1 }
 0x3ac   : > { %v2511_v63 = vadd.f32 %v5003_v45, %v2510_v9  ;;  %v2576_v4 = vmax.f32 %v2519_v5, 0.0 }
 0x3ae   : > { %v2574_v20 = vmax.f32 %v2511_v63, 0.0  ;;  %v2591_v19 = vpack.c.bf16 %v2576_v4, %v2575_v36 }
 0x3b0   : > { %v2590_v28 = vpack.c.bf16 %v2574_v20, %v2573_v59 }
 0x3b2   : > { %3742 = vmatprep.mubr.bf16.mxu1 %v2590_v28 }
 0x3b3   : > { %3743 = vmatmul.mubr.bf16.gmra.mxu1 %v2591_v19 }
 0x3b5   : > { %v3712_v0 = vpop.f32.mrf.mxu1 }
 0x3b6   : > { %v2532_v31 = vadd.f32 %v3712_v0, %v5003_v45 }
 0x3b7   : > { %v2523_v26 = vpop.f32.mrf.mxu1 }
 0x3b8   : > { %v2524_v13 = vadd.f32 %v5003_v45, %v2523_v26  ;;  %v2579_v11 = vmax.f32 %v2532_v31, 0.0 }
 0x3b9   : > { %v3713_v43 = vpop.f32.mrf.mxu1 }
 0x3ba   : > { %v2535_v10 = vadd.f32 %v3713_v43, %v5003_v45  ;;  %v2577_v6 = vmax.f32 %v2524_v13, 0.0 }
 0x3bb   : > { %v2526_v25 = vpop.f32.mrf.mxu1 }
 0x3bc   : > { %v2527_v1 = vadd.f32 %v5003_v45, %v2526_v25  ;;  %v2580_v35 = vmax.f32 %v2535_v10, 0.0 }
 0x3be   : > { %v2578_v8 = vmax.f32 %v2527_v1, 0.0  ;;  %v2593_v44 = vpack.c.bf16 %v2580_v35, %v2579_v11 }
 0x3c0   : > { %v2592_v16 = vpack.c.bf16 %v2578_v8, %v2577_v6 }
 0x3c2   : > { %3746 = vmatprep.mubr.bf16.mxu1 %v2592_v16 }
 0x3c3   : > { %3747 = vmatmul.mubr.bf16.gmra.mxu1 %v2593_v44 }
 0x3c5   : > { %v3716_v49 = vpop.f32.mrf.mxu1 }
 0x3c6   : > { %v2548_v38 = vadd.f32 %v3716_v49, %v5003_v45 }
 0x3c7   : > { %v2539_v24 = vpop.f32.mrf.mxu1 }
 0x3c8   : > { %v2540_v61 = vadd.f32 %v5003_v45, %v2539_v24  ;;  %v2583_v29 = vmax.f32 %v2548_v38, 0.0 }
 0x3c9   : > { %v3717_v17 = vpop.f32.mrf.mxu1 }
 0x3ca   : > { %v2551_v3 = vadd.f32 %v3717_v17, %v5003_v45  ;;  %v2581_v21 = vmax.f32 %v2540_v61, 0.0 }
 0x3cb   : > { %v2542_v22 = vpop.f32.mrf.mxu1 }
 0x3cc   : > { %v2543_v56 = vadd.f32 %v5003_v45, %v2542_v22  ;;  %v2584_v18 = vmax.f32 %v2551_v3, 0.0 }
 0x3ce   : > { %v2582_v40 = vmax.f32 %v2543_v56, 0.0  ;;  %v2595_v32 = vpack.c.bf16 %v2584_v18, %v2583_v29 }
 0x3d0   : > { %v2594_v41 = vpack.c.bf16 %v2582_v40, %v2581_v21 }
 0x3d1   : > { %v3720_v27 = vpop.f32.mrf.mxu1 }
 0x3d2   : > { %3750 = vmatprep.mubr.bf16.mxu1 %v2594_v41  ;;  %v2564_v34 = vadd.f32 %v3720_v27, %v5003_v45 }
 0x3d3   : > { %v2555_v51 = vpop.f32.mrf.mxu1  ;;  %3751 = vmatmul.mubr.bf16.gmra.mxu1 %v2595_v32 }
 0x3d4   : > { %v2556_v23 = vadd.f32 %v5003_v45, %v2555_v51  ;;  %v2587_v39 = vmax.f32 %v2564_v34, 0.0 }
 0x3d5   : > { %v3721_v33 = vpop.f32.mrf.mxu1 }
 0x3d6   : > { %v2585_v50 = vmax.f32 %v2556_v23, 0.0  ;;  %v2597_v14 = vpack.c.bf16 %v2587_v39, %v2587_v39 }
 0x3d7   : > { %v2558_v30 = vpop.f32.mrf.mxu1 }
 0x3d8   : > { %v2559_v37 = vadd.f32 %v5003_v45, %v2558_v30  ;;  %v5027_v45 = vld [vmem:[%s5122_s8] ss:$0 sm:$0xff] }
 0x3da   : > { %v2586_v46 = vmax.f32 %v2559_v37, 0.0 }
 0x3dc   : > { %v2596_v57 = vpack.c.bf16 %v2586_v46, %v2585_v50 }
 0x3de   : > { %3754 = vmatprep.mubr.bf16.mxu1 %v2596_v57 }
 0x3df   : > { %3755 = vmatmul.mubr.bf16.gmra.mxu1 %v2597_v14 }
 0x463   : > { %v3740_v47 = vpop.f32.mrf.mxu1 }
 0x464   : > { %v2712_v53 = vadd.f32 %v3740_v47, %v5027_v45 }
 0x465   : > { %v2703_v54 = vpop.f32.mrf.mxu1 }
 0x466   : > { %v2704_v15 = vadd.f32 %v5027_v45, %v2703_v54  ;;  %v2783_v2 = vmax.f32 %v2712_v53, 0.0 }
 0x467   : > { %v3741_v48 = vpop.f32.mrf.mxu1 }
 0x468   : > { %v2715_v52 = vadd.f32 %v3741_v48, %v5027_v45  ;;  %v2781_v55 = vmax.f32 %v2704_v15, 0.0 }
 0x469   : > { %v2706_v62 = vpop.f32.mrf.mxu1 }
 0x46a   : > { %v2707_v42 = vadd.f32 %v5027_v45, %v2706_v62  ;;  %v2784_v12 = vmax.f32 %v2715_v52, 0.0  ;;  %v3452_v62 = vld [vmem:[%s5124_s10] ss:$0 sm:$0xff] }
 0x46c   : > { %v2782_v5 = vmax.f32 %v2707_v42, 0.0  ;;  %v2801_v63 = vpack.c.bf16 %v2784_v12, %v2783_v2 }
 0x46e   : > { %v2800_v9 = vpack.c.bf16 %v2782_v5, %v2781_v55 }
 0x470   : > { %3774 = vmatprep.mubr.bf16.mxu0 %v2800_v9 }
 0x471   : > { %3775 = vmatmul.mubr.bf16.vlgmr.msra.gmra.mxu0 %v2801_v63 }
 0x473   : > { %v3744_v4 = vpop.f32.mrf.mxu1 }
 0x474   : > { %v2728_v19 = vadd.f32 %v3744_v4, %v5027_v45 }
 0x475   : > { %v2719_v59 = vpop.f32.mrf.mxu1 }
 0x476   : > { %v2720_v36 = vadd.f32 %v5027_v45, %v2719_v59  ;;  %v2787_v31 = vmax.f32 %v2728_v19, 0.0 }
 0x477   : > { %v3745_v20 = vpop.f32.mrf.mxu1 }
 0x478   : > { %v2731_v28 = vadd.f32 %v3745_v20, %v5027_v45  ;;  %v2785_v13 = vmax.f32 %v2720_v36, 0.0 }
 0x479   : > { %v2722_v0 = vpop.f32.mrf.mxu1 }
 0x47a   : > { %v2723_v26 = vadd.f32 %v5027_v45, %v2722_v0  ;;  %v2788_v43 = vmax.f32 %v2731_v28, 0.0 }
 0x47c   : > { %v2786_v10 = vmax.f32 %v2723_v26, 0.0  ;;  %v2803_v1 = vpack.c.bf16 %v2788_v43, %v2787_v31 }
 0x47e   : > { %v2802_v25 = vpack.c.bf16 %v2786_v10, %v2785_v13 }
 0x480   : > { %3778 = vmatprep.mubr.bf16.mxu0 %v2802_v25 }
 0x481   : > { %3779 = vmatmul.mubr.bf16.gmra.mxu0 %v2803_v1 }
 0x483   : > { %v3748_v35 = vpop.f32.mrf.mxu1 }
 0x484   : > { %v2744_v44 = vadd.f32 %v3748_v35, %v5027_v45 }
 0x485   : > { %v2735_v6 = vpop.f32.mrf.mxu1 }
 0x486   : > { %v2736_v11 = vadd.f32 %v5027_v45, %v2735_v6  ;;  %v2791_v38 = vmax.f32 %v2744_v44, 0.0 }
 0x487   : > { %v3749_v8 = vpop.f32.mrf.mxu1 }
 0x488   : > { %v2747_v16 = vadd.f32 %v3749_v8, %v5027_v45  ;;  %v2789_v61 = vmax.f32 %v2736_v11, 0.0 }
 0x489   : > { %v2738_v49 = vpop.f32.mrf.mxu1 }
 0x48a   : > { %v2739_v24 = vadd.f32 %v5027_v45, %v2738_v49  ;;  %v2792_v17 = vmax.f32 %v2747_v16, 0.0 }
 0x48c   : > { %v2790_v3 = vmax.f32 %v2739_v24, 0.0  ;;  %v2805_v56 = vpack.c.bf16 %v2792_v17, %v2791_v38 }
 0x48e   : > { %v2804_v22 = vpack.c.bf16 %v2790_v3, %v2789_v61 }
 0x490   : > { %3782 = vmatprep.mubr.bf16.mxu0 %v2804_v22 }
 0x491   : > { %3783 = vmatmul.mubr.bf16.gmra.mxu0 %v2805_v56 }
 0x493   : > { %v3752_v18 = vpop.f32.mrf.mxu1 }
 0x494   : > { %v2760_v32 = vadd.f32 %v3752_v18, %v5027_v45 }
 0x495   : > { %v2751_v21 = vpop.f32.mrf.mxu1 }
 0x496   : > { %v2752_v29 = vadd.f32 %v5027_v45, %v2751_v21  ;;  %v2795_v30 = vmax.f32 %v2760_v32, 0.0 }
 0x497   : > { %v3753_v40 = vpop.f32.mrf.mxu1 }
 0x498   : > { %v2763_v41 = vadd.f32 %v3753_v40, %v5027_v45  ;;  %v2793_v33 = vmax.f32 %v2752_v29, 0.0 }
 0x499   : > { %v2754_v27 = vpop.f32.mrf.mxu1 }
 0x49a   : > { %v2755_v51 = vadd.f32 %v5027_v45, %v2754_v27  ;;  %v2796_v34 = vmax.f32 %v2763_v41, 0.0 }
 0x49c   : > { %v2794_v23 = vmax.f32 %v2755_v51, 0.0  ;;  %v2807_v39 = vpack.c.bf16 %v2796_v34, %v2795_v30 }
 0x49e   : > { %v2806_v37 = vpack.c.bf16 %v2794_v23, %v2793_v33 }
 0x49f   : > { %v3756_v50 = vpop.f32.mrf.mxu1 }
 0x4a0   : > { %3786 = vmatprep.mubr.bf16.mxu0 %v2806_v37  ;;  %v2776_v57 = vadd.f32 %v3756_v50, %v5027_v45 }
 0x4a1   : > { %v2767_v46 = vpop.f32.mrf.mxu1  ;;  %3787 = vmatmul.mubr.bf16.gmra.mxu0 %v2807_v39 }
 0x4a2   : > { %v2768_v60 = vadd.f32 %v5027_v45, %v2767_v46  ;;  %v2799_v47 = vmax.f32 %v2776_v57, 0.0 }
 0x4a3   : > { %v3757_v14 = vpop.f32.mrf.mxu1 }
 0x4a4   : > { %v2797_v54 = vmax.f32 %v2768_v60, 0.0  ;;  %v2809_v52 = vpack.c.bf16 %v2799_v47, %v2799_v47 }
 0x4a5   : > { %v2770_v7 = vpop.f32.mrf.mxu1 }
 0x4a6   : > { %v2771_v58 = vadd.f32 %v5027_v45, %v2770_v7 }
 0x4a8   : > { %v2798_v48 = vmax.f32 %v2771_v58, 0.0 }
 0x4aa   : > { %v2808_v15 = vpack.c.bf16 %v2798_v48, %v2797_v54 }
 0x4ac   : > { %3790 = vmatprep.mubr.bf16.mxu0 %v2808_v15 }
 0x4ad   : > { %3791 = vmatmul.mubr.bf16.gmra.mxu0 %v2809_v52 }
 0x531   : > { %v3776_v53 = vpop.f32.mrf.mxu0 }
 0x532   : > { %v2924_v55 = vadd.f32 %v3776_v53, %v3452_v62 }
 0x533   : > { %v2915_v42 = vpop.f32.mrf.mxu0 }
 0x534   : > { %v2916_v9 = vadd.f32 %v3452_v62, %v2915_v42 }
 0x535   : > { %v3777_v12 = vpop.f32.mrf.mxu0 }
 0x536   : > { %v2927_v5 = vadd.f32 %v3777_v12, %v3452_v62 }
 0x537   : > { %v2918_v2 = vpop.f32.mrf.mxu0 }
 0x538   : > { %v3511_v45 = vpack.c.bf16 %v2927_v5, %v2924_v55  ;;  %v2919_v63 = vadd.f32 %v3452_v62, %v2918_v2 }
 0x53a   : > { %3548 = vst [vmem:[%s5052_s14 + $0x8] sm:$0xff] %v3511_v45   ;;  %v3506_v4 = vpack.c.bf16 %v2919_v63, %v2916_v9 }
 0x53c   : > { %3507 = vst [vmem:[%s5052_s14] sm:$0xff] %v3506_v4  }
 0x541   : > { %v3780_v59 = vpop.f32.mrf.mxu0 }
 0x542   : > { %v2940_v28 = vadd.f32 %v3780_v59, %v3452_v62 }
 0x543   : > { %v2931_v20 = vpop.f32.mrf.mxu0 }
 0x544   : > { %v2932_v26 = vadd.f32 %v3452_v62, %v2931_v20 }
 0x545   : > { %v3781_v36 = vpop.f32.mrf.mxu0 }
 0x546   : > { %v2943_v19 = vadd.f32 %v3781_v36, %v3452_v62 }
 0x547   : > { %v2934_v0 = vpop.f32.mrf.mxu0 }
 0x548   : > { %v3521_v43 = vpack.c.bf16 %v2943_v19, %v2940_v28  ;;  %v2935_v13 = vadd.f32 %v3452_v62, %v2934_v0 }
 0x54a   : > { %3550 = vst [vmem:[%s5052_s14 + $0x18] sm:$0xff] %v3521_v43   ;;  %v3516_v10 = vpack.c.bf16 %v2935_v13, %v2932_v26 }
 0x54c   : > { %3549 = vst [vmem:[%s5052_s14 + $0x10] sm:$0xff] %v3516_v10  }
 0x551   : > { %v3784_v31 = vpop.f32.mrf.mxu0 }
 0x552   : > { %v2956_v35 = vadd.f32 %v3784_v31, %v3452_v62 }
 0x553   : > { %v2947_v25 = vpop.f32.mrf.mxu0 }
 0x554   : > { %v2948_v11 = vadd.f32 %v3452_v62, %v2947_v25 }
 0x555   : > { %v3785_v1 = vpop.f32.mrf.mxu0 }
 0x556   : > { %v2959_v6 = vadd.f32 %v3785_v1, %v3452_v62 }
 0x557   : > { %v2950_v8 = vpop.f32.mrf.mxu0 }
 0x558   : > { %v3531_v16 = vpack.c.bf16 %v2959_v6, %v2956_v35  ;;  %v2951_v44 = vadd.f32 %v3452_v62, %v2950_v8 }
 0x55a   : > { %3552 = vst [vmem:[%s5052_s14 + $0x28] sm:$0xff] %v3531_v16   ;;  %v3526_v49 = vpack.c.bf16 %v2951_v44, %v2948_v11 }
 0x55c   : > { %3551 = vst [vmem:[%s5052_s14 + $0x20] sm:$0xff] %v3526_v49  }
 0x561   : > { %v3788_v24 = vpop.f32.mrf.mxu0 }
 0x562   : > { %v2972_v3 = vadd.f32 %v3788_v24, %v3452_v62 }
 0x563   : > { %v2963_v17 = vpop.f32.mrf.mxu0 }
 0x564   : > { %v2964_v56 = vadd.f32 %v3452_v62, %v2963_v17 }
 0x565   : > { %v3789_v61 = vpop.f32.mrf.mxu0 }
 0x566   : > { %v2975_v38 = vadd.f32 %v3789_v61, %v3452_v62 }
 0x567   : > { %v2966_v22 = vpop.f32.mrf.mxu0 }
 0x568   : > { %v3541_v18 = vpack.c.bf16 %v2975_v38, %v2972_v3  ;;  %v2967_v21 = vadd.f32 %v3452_v62, %v2966_v22 }
 0x56a   : > { %3554 = vst [vmem:[%s5052_s14 + $0x38] sm:$0xff] %v3541_v18   ;;  %v3536_v40 = vpack.c.bf16 %v2967_v21, %v2964_v56 }
 0x56c   : > { %3553 = vst [vmem:[%s5052_s14 + $0x30] sm:$0xff] %v3536_v40  }
 0x56d   : > { %v3792_v29 = vpop.f32.mrf.mxu0 }
 0x56e   : > { %v2988_v41 = vadd.f32 %v3792_v29, %v3452_v62 }
 0x56f   : > { %v2979_v32 = vpop.f32.mrf.mxu0 }
 0x570   : > { %v3501_v27 = vpack.c.bf16 %v2988_v41, %v2988_v41  ;;  %v2980_v33 = vadd.f32 %v3452_v62, %v2979_v32 }
 0x571   : > { %v3793_v51 = vpop.f32.mrf.mxu0 }
 0x572   : > { %3088 = vst [vmem:[%s5052_s14 + $0x48] sm:$0xf] %v3501_v27 }
 0x573   : > { %v2982_v34 = vpop.f32.mrf.mxu0 }
 0x574   : > { %v2983_v23 = vadd.f32 %v3452_v62, %v2982_v34 }
 0x576   : > { %v3546_v30 = vpack.c.bf16 %v2983_v23, %v2980_v33 }
 0x578   : > { %3555 = vst [vmem:[%s5052_s14 + $0x40] sm:$0xff] %v3546_v30  }
 0x579   : > { %4392 = shalt.err (!%p4389_p3)
}
 0x57a   : > { %s4393_s26 = scalar_lea.hbm %s5068_s24, 1216  ;;  %s4397_s9 = scalar_lea.hbm %s5125_s11, 2432 }
 0x57b   : > { %p4394_p13 = scmp.ne.s32.totalorder %s5068_s24, %s4393_s26  ;;  %p4398_p9 = scmp.lt.s32.totalorder %s5068_s24, %s5125_s11 }
 0x57c   : > { %p4399_p4 = scmp.lt.s32.totalorder %s4397_s9, %s4393_s26 }
 0x57d   : > { %p4395_p5 = pnand %p4394_p13, %p5170_p6 }
 0x57e   : > { %p4400_p10 = por %p4399_p4, %p4398_p9 }
 0x57f   : > { %p4396_p8 = pneg %p4395_p5 }
 0x581   : > { %p4401_p12 = pnand %p4400_p10, %p4396_p8 }
 0x583   : > { %4404 = shalt.err (!%p4401_p12)
}
 0x584   : > { %s4471_s1 = smov 64   ;;  %s4472_s3 = smov 4  }
 0x585   : > { %3852 = dma.vmem_to_hbm [thread:$0]  (%p5170_p6), %s5070_s16, 1216, %s5068_s24, %s3090_s29, %s4471_s1, %s4471_s1, %s4472_s3  }
 0x586 PF: > { %s3118_s27 = sand.u32 1, %s4443_s17   ;;  %p5171_p0 = scmp.ne.s32.totalorder %s5146_s30, 0 }
 0x587   : > { %p5172_p2 = scmp.ge.s32.totalorder %s4455_s20, 2  ;;  %s3119_s23 = scalar_lea.sflag [#allocation4], %s3118_s27 }
 0x589   : > { %p3875_p7 = pnand %p5172_p2, %p5171_p0 }
 0x58b   : > { %p3876_p1 = pneg %p3875_p7 }
 0x58d   : > { %4438 = dma.done.wait (%p3876_p1), %s3119_s23, 1216  }
 0x58e   : > { %4440 = vsyncadd (%p3876_p1), %s3119_s23, 4294966080  ;;  %p27_p11 = scmp.ge.s32.totalorder %s4627_s28, 4   ;;  %s5173_s17 = smov %s4447_s18 }
 0x58f   : > { %s5174_s18 = smov %s4451_s19  ;;  %s5175_s19 = smov %s4638_s22 }
 0x590   : > { %s5176_s20 = smov %s4627_s28  ;;  %29 = sbr.rel (!%p27_p11) target bundleno = 14 (0xe), region = 129 }
 0x595   :  { %3124 = vsyncpa [#allocation3], 1 }
 0x596   :  { %3126 = vsyncpa [#allocation3 + $0x1], 1 }
 0x597   :  { %3127 = vsyncpa [#allocation6], 1 }
 0x598   :  { %3128 = vsyncpa [#allocation9], 1 }
 0x599   :  { %3129 = vsyncpa [#allocation12], 1 }
 0x59a   :  { %3130 = vsyncpa [#allocation4], 1 }
 0x59b   :  { %3132 = vsyncpa [#allocation4 + $0x1], 1 }

</bundles_post_ra>
